<compile_context>
chip_gen: v7x
topology: tpu7x:2x2x1
jax: 0.10.0
libtpu: 0.0.40
codegen_flags: <defaults>
</compile_context>

<pallas_src>
import functools

import jax
import jax.numpy as jnp
from jax.experimental import pallas as pl
from jax.experimental.pallas import tpu as pltpu

KS = 7            # spatial-attention conv kernel size
PAD = KS // 2     # "same" padding = 3


def _round_up(n, m):
    return ((n + m - 1) // m) * m


def _cbam_kernel(x_ref, w1b_ref, w2b_ref, wtab_ref, o_ref, *, B, C, H, W, PADL):
    # x_ref   : (B*C, H*W)    batch-stacked, lane-dense activations
    # w1b_ref : (B*Cr, B*C)   block-diagonal fc1 weight (B copies of w1)
    # w2b_ref : (B*C, B*Cr)   block-diagonal fc2 weight (B copies of w2)
    # wtab_ref: (QROWS, KS)   7x7 conv weights, row = kw*2 + m, column = kh
    # o_ref   : (B*C, H*W)
    HW = H * W
    LPI = HW + 2 * PADL          # per-image padded lane-slot width (mult of 128)
    LTOT = B * LPI
    QROWS = wtab_ref.shape[0]    # 2*KS rounded up to a sublane multiple (= 16)

    x = x_ref[...].astype(jnp.float32)                     # (B*C, HW)

    # ---------------- Channel attention ----------------
    avg_c = jnp.mean(x, axis=1, keepdims=True)             # (B*C, 1) lane reduce
    max_c = jnp.max(x, axis=1, keepdims=True)              # (B*C, 1)
    pooled = jnp.concatenate([avg_c, max_c], axis=1)       # (B*C, 2)
    # fc1 for both pooling paths and all batch elements in one small dot.
    h = jnp.dot(w1b_ref[...], pooled, preferred_element_type=jnp.float32)
    h = jnp.maximum(h, 0.0)                                # (B*Cr, 2)
    # fc2 is linear -> sum the relu'd avg/max paths before the second dot.
    z = jnp.dot(w2b_ref[...], h[:, 0:1] + h[:, 1:2],
                preferred_element_type=jnp.float32)        # (B*C, 1)
    ca = jax.nn.sigmoid(z)                                 # (B*C, 1)
    out1 = x * ca                                          # (B*C, HW)

    # ---------------- Spatial attention ----------------
    # Channel mean/max per image -> two map rows per image.  Every image gets
    # its own zero-padded, 128-aligned lane slot so lane shifts of up to
    # PAD*W + PAD lanes never mix images and never wrap onto live data.
    zpad = jnp.zeros((2, PADL), jnp.float32)
    pieces = []
    for b in range(B):
        blk = out1[b * C:(b + 1) * C, :]                   # (C, HW)
        avg_s = jnp.mean(blk, axis=0, keepdims=True)       # (1, HW)
        max_s = jnp.max(blk, axis=0, keepdims=True)        # (1, HW)
        pieces += [zpad, jnp.concatenate([avg_s, max_s], axis=0), zpad]
    padded = jnp.concatenate(pieces, axis=1)               # (2, LTOT)

    # Column-validity mask for the kw shifts (periodic per lane slot).
    lidx = jax.lax.broadcasted_iota(jnp.int32, (1, LTOT), 1)
    col = ((lidx % LPI) - PADL) % W

    # 7 kw lane-shifts (XLU rolls), stacked on sublanes: row = kw*2 + m.
    qrows = []
    for kw in range(KS):
        dw = kw - PAD
        rolled = pltpu.roll(padded, shift=(-dw) % LTOT, axis=1)
        ok = jnp.logical_and(col + dw >= 0, col + dw < W)
        qrows.append(jnp.where(ok, rolled, 0.0))
    if QROWS > 2 * KS:
        qrows.append(jnp.zeros((QROWS - 2 * KS, LTOT), jnp.float32))
    q = jnp.concatenate(qrows, axis=0)                     # (QROWS, LTOT)

    # 7 kh row-shifts: one roll (XLU) + one per-row-weighted FMA (VPU) each,
    # on the full stacked tensor.  Avg/max (and kw) rows are combined only at
    # the end with a single sublane reduction.
    wtab = wtab_ref[...].astype(jnp.float32)               # (QROWS, KS)
    acc = jnp.zeros((QROWS, LTOT), jnp.float32)
    for kh in range(KS):
        sh = (PAD - kh) * W
        acc = acc + wtab[:, kh:kh + 1] * pltpu.roll(q, shift=sh % LTOT, axis=1)
    conv = jnp.sum(acc, axis=0, keepdims=True)             # (1, LTOT)
    sa = jax.nn.sigmoid(conv)

    for b in range(B):
        lo = b * LPI + PADL                                # 128-aligned slice
        sab = sa[:, lo:lo + HW]                            # (1, HW)
        o_ref[b * C:(b + 1) * C, :] = (
            out1[b * C:(b + 1) * C, :] * sab).astype(o_ref.dtype)


def cbam_forward(x, w1, w2, wsp):
    """x: (B, C, H, W); w1: (C//r, C); w2: (C, C//r); wsp: (1, 2, 7, 7)."""
    B, C, H, W = x.shape
    Cr = w1.shape[0]
    HW = H * W
    f32 = jnp.float32

    # Per-image padded lane-slot: >= PAD*W + PAD zeros on each side, 128-aligned.
    PADL = _round_up(PAD * W + PAD, 128)
    QROWS = _round_up(2 * KS, 8)

    x_flat = x.reshape(B * C, HW)                          # lane-dense layout

    # Block-diagonal channel-MLP weights: B independent copies of w1 / w2.
    eye_b = jnp.eye(B, dtype=f32)
    w1b = jnp.kron(eye_b, w1.astype(f32))                  # (B*Cr, B*C)
    w2b = jnp.kron(eye_b, w2.astype(f32))                  # (B*C, B*Cr)

    # Per-row weight table for the spatial conv: row = kw*2 + m, column = kh.
    wsp_f = wsp.astype(f32).reshape(2, KS, KS)             # (m, kh, kw)
    wtab = jnp.transpose(wsp_f, (2, 0, 1)).reshape(2 * KS, KS)
    wtab = jnp.pad(wtab, ((0, QROWS - 2 * KS), (0, 0)))    # (QROWS, KS)

    kernel = functools.partial(_cbam_kernel, B=B, C=C, H=H, W=W, PADL=PADL)

    out_flat = pl.pallas_call(
        kernel,
        out_shape=jax.ShapeDtypeStruct((B * C, HW), x.dtype),
        grid=(1,),
        in_specs=[
            pl.BlockSpec((B * C, HW), lambda i: (0, 0)),
            pl.BlockSpec((B * Cr, B * C), lambda i: (0, 0)),
            pl.BlockSpec((B * C, B * Cr), lambda i: (0, 0)),
            pl.BlockSpec((QROWS, KS), lambda i: (0, 0)),
        ],
        out_specs=pl.BlockSpec((B * C, HW), lambda i: (0, 0)),
        compiler_params=pltpu.CompilerParams(
            dimension_semantics=("arbitrary",)),
    )(x_flat, w1b, w2b, wtab)
    # TODO(synk): production shapes (e.g. C=512, H=W=56 -> HW=3136, not a
    # multiple of 128, ~6.4 MB/map) need H-tiling + explicit vmem_limit_bytes
    # (64 MiB on v7x), and on v7x a batch grid axis marked "parallel" so both
    # TensorCores engage; at this toy size one block trivially fits VMEM.
    return out_flat.reshape(B, C, H, W)


def cbam_reference(x, w1, w2, wsp):
    """Pure-JAX reference reproducing the PyTorch module semantics."""
    avg = jnp.mean(x, axis=(2, 3))                         # (B, C)
    mx = jnp.max(x, axis=(2, 3))                           # (B, C)

    def mlp(v):
        return jnp.maximum(v @ w1.T, 0.0) @ w2.T

    ca = jax.nn.sigmoid(mlp(avg) + mlp(mx))                # (B, C)
    out1 = x * ca[:, :, None, None]

    avg_s = jnp.mean(out1, axis=1, keepdims=True)          # (B, 1, H, W)
    max_s = jnp.max(out1, axis=1, keepdims=True)           # (B, 1, H, W)
    cat = jnp.concatenate([avg_s, max_s], axis=1)          # (B, 2, H, W)
    conv = jax.lax.conv_general_dilated(
        cat, wsp, window_strides=(1, 1),
        padding=[(PAD, PAD), (PAD, PAD)],
        dimension_numbers=("NCHW", "OIHW", "NCHW"))        # (B, 1, H, W)
    sa = jax.nn.sigmoid(conv)
    return out1 * sa


if __name__ == "__main__":
    B, C, H, W = 2, 16, 16, 16          # channel=16, ratio=8 -> hidden=2
    Cr = C // 8

    key = jax.random.PRNGKey(0)
    kx, k1, k2, k3 = jax.random.split(key, 4)

    x = jax.random.normal(kx, (B, C, H, W), dtype=jnp.float32)
    w1 = 0.3 * jax.random.normal(k1, (Cr, C), dtype=jnp.float32)       # fc1
    w2 = 0.3 * jax.random.normal(k2, (C, Cr), dtype=jnp.float32)       # fc2
    wsp = 0.1 * jax.random.normal(k3, (1, 2, KS, KS), dtype=jnp.float32)

    out = jax.block_until_ready(jax.jit(cbam_forward)(x, w1, w2, wsp))
    ref = jax.block_until_ready(cbam_reference(x, w1, w2, wsp))

    assert out.shape == (B, C, H, W)
    err = float(jnp.max(jnp.abs(out - ref)))
    assert err < 1e-4, f"max abs err = {err}"
    print("KERNEL_OK")
</pallas_src>

<mosaic_0001>
module attributes {stable_mosaic.version = 11 : i64} {
  func.func @_cbam_kernel(%arg0: i32, %arg1: memref<32x256xf32, #tpu.memory_space<vmem>>, %arg2: memref<4x32xf32, #tpu.memory_space<vmem>>, %arg3: memref<32x4xf32, #tpu.memory_space<vmem>>, %arg4: memref<16x7xf32, #tpu.memory_space<vmem>>, %arg5: memref<32x256xf32, #tpu.memory_space<vmem>>) attributes {dimension_semantics = [#tpu.dimension_semantics<arbitrary>], iteration_bounds = array<i64: 1>, scalar_prefetch = 0 : i64, scratch_operands = 0 : i64, tpu.core_type = #tpu.core_type<tc>, window_params = [{pipeline_mode = #tpu.pipeline_mode<synchronous>, transform_indices = @transform_0, window_bounds = array<i64: 32, 256>}, {pipeline_mode = #tpu.pipeline_mode<synchronous>, transform_indices = @transform_1, window_bounds = array<i64: 4, 32>}, {pipeline_mode = #tpu.pipeline_mode<synchronous>, transform_indices = @transform_2, window_bounds = array<i64: 32, 4>}, {pipeline_mode = #tpu.pipeline_mode<synchronous>, transform_indices = @transform_3, window_bounds = array<i64: 16, 7>}, {pipeline_mode = #tpu.pipeline_mode<synchronous>, transform_indices = @transform_4, window_bounds = array<i64: 32, 256>}]} {
    %c0 = arith.constant 0 : index
    %c0_0 = arith.constant 0 : index
    %0 = vector.load %arg1[%c0, %c0_0] : memref<32x256xf32, #tpu.memory_space<vmem>>, vector<32x256xf32>
    %cst = arith.constant dense<0.000000e+00> : vector<32xf32>
    %1 = vector.multi_reduction <add>, %0, %cst [1] : vector<32x256xf32> to vector<32xf32>
    %2 = vector.shape_cast %1 : vector<32xf32> to vector<32x1xf32>
    %cst_1 = arith.constant 2.560000e+02 : f32
    %3 = vector.broadcast %cst_1 : f32 to vector<32x1xf32>
    %4 = arith.divf %2, %3 : vector<32x1xf32>
    %cst_2 = arith.constant dense<0xFF800000> : vector<32xf32>
    %5 = vector.multi_reduction <maximumf>, %0, %cst_2 [1] : vector<32x256xf32> to vector<32xf32>
    %6 = vector.shape_cast %5 : vector<32xf32> to vector<32x1xf32>
    %7 = tpu.concatenate %4, %6 in 1 : vector<32x1xf32>, vector<32x1xf32> -> vector<32x2xf32>
    %c0_3 = arith.constant 0 : index
    %c0_4 = arith.constant 0 : index
    %8 = vector.load %arg2[%c0_3, %c0_4] : memref<4x32xf32, #tpu.memory_space<vmem>>, vector<4x32xf32>
    %cst_5 = arith.constant dense<0.000000e+00> : vector<4x2xf32>
    %9 = tpu.matmul %8, %7, %cst_5 {dimension_numbers = #tpu.dot_dimension_numbers<[1], [0], [0], [1], [0, 0, 1, 1], [], []>} : vector<4x32xf32>, vector<32x2xf32>, vector<4x2xf32> -> vector<4x2xf32>
    %cst_6 = arith.constant 0.000000e+00 : f32
    %10 = vector.broadcast %cst_6 : f32 to vector<4x2xf32>
    %11 = arith.maximumf %9, %10 : vector<4x2xf32>
    %c0_7 = arith.constant 0 : index
    %c0_8 = arith.constant 0 : index
    %12 = vector.load %arg3[%c0_7, %c0_8] : memref<32x4xf32, #tpu.memory_space<vmem>>, vector<32x4xf32>
    %13 = vector.extract_strided_slice %11 {offsets = [0, 0], sizes = [4, 1], strides = [1, 1]} : vector<4x2xf32> to vector<4x1xf32>
    %14 = vector.extract_strided_slice %11 {offsets = [0, 1], sizes = [4, 1], strides = [1, 1]} : vector<4x2xf32> to vector<4x1xf32>
    %15 = arith.addf %13, %14 : vector<4x1xf32>
    %cst_9 = arith.constant dense<0.000000e+00> : vector<32x1xf32>
    %16 = tpu.matmul %12, %15, %cst_9 {dimension_numbers = #tpu.dot_dimension_numbers<[1], [0], [0], [1], [0, 0, 1, 1], [], []>} : vector<32x4xf32>, vector<4x1xf32>, vector<32x1xf32> -> vector<32x1xf32>
    %17 = arith.negf %16 : vector<32x1xf32>
    %18 = math.exp %17 : vector<32x1xf32>
    %cst_10 = arith.constant 1.000000e+00 : f32
    %19 = vector.broadcast %cst_10 : f32 to vector<32x1xf32>
    %20 = arith.addf %19, %18 : vector<32x1xf32>
    %21 = arith.divf %19, %20 : vector<32x1xf32>
    %22 = vector.broadcast %21 : vector<32x1xf32> to vector<32x256xf32>
    %23 = arith.mulf %0, %22 : vector<32x256xf32>
    %cst_11 = arith.constant 0.000000e+00 : f32
    %24 = vector.broadcast %cst_11 : f32 to vector<2x128xf32>
    %25 = vector.extract_strided_slice %23 {offsets = [0, 0], sizes = [16, 256], strides = [1, 1]} : vector<32x256xf32> to vector<16x256xf32>
    %cst_12 = arith.constant dense<0.000000e+00> : vector<256xf32>
    %26 = vector.multi_reduction <add>, %25, %cst_12 [0] : vector<16x256xf32> to vector<256xf32>
    %27 = vector.shape_cast %26 : vector<256xf32> to vector<1x256xf32>
    %cst_13 = arith.constant 1.600000e+01 : f32
    %28 = vector.broadcast %cst_13 : f32 to vector<1x256xf32>
    %29 = arith.divf %27, %28 : vector<1x256xf32>
    %cst_14 = arith.constant dense<0xFF800000> : vector<256xf32>
    %30 = vector.multi_reduction <maximumf>, %25, %cst_14 [0] : vector<16x256xf32> to vector<256xf32>
    %31 = vector.shape_cast %30 : vector<256xf32> to vector<1x256xf32>
    %32 = tpu.concatenate %29, %31 in 0 : vector<1x256xf32>, vector<1x256xf32> -> vector<2x256xf32>
    %33 = vector.extract_strided_slice %23 {offsets = [16, 0], sizes = [16, 256], strides = [1, 1]} : vector<32x256xf32> to vector<16x256xf32>
    %cst_15 = arith.constant dense<0.000000e+00> : vector<256xf32>
    %34 = vector.multi_reduction <add>, %33, %cst_15 [0] : vector<16x256xf32> to vector<256xf32>
    %35 = vector.shape_cast %34 : vector<256xf32> to vector<1x256xf32>
    %cst_16 = arith.constant 1.600000e+01 : f32
    %36 = vector.broadcast %cst_16 : f32 to vector<1x256xf32>
    %37 = arith.divf %35, %36 : vector<1x256xf32>
    %cst_17 = arith.constant dense<0xFF800000> : vector<256xf32>
    %38 = vector.multi_reduction <maximumf>, %33, %cst_17 [0] : vector<16x256xf32> to vector<256xf32>
    %39 = vector.shape_cast %38 : vector<256xf32> to vector<1x256xf32>
    %40 = tpu.concatenate %37, %39 in 0 : vector<1x256xf32>, vector<1x256xf32> -> vector<2x256xf32>
    %41 = tpu.concatenate %24, %32, %24, %24, %40, %24 in 1 : vector<2x128xf32>, vector<2x256xf32>, vector<2x128xf32>, vector<2x128xf32>, vector<2x256xf32>, vector<2x128xf32> -> vector<2x1024xf32>
    %42 = tpu.iota {dimensions = array<i32: 1>} : vector<1x1024xi32>
    %c512_i32 = arith.constant 512 : i32
    %c0_i32 = arith.constant 0 : i32
    %43 = arith.cmpi eq, %c512_i32, %c0_i32 : i32
    %c1_i32 = arith.constant 1 : i32
    %44 = arith.select %43, %c1_i32, %c512_i32 : i32
    %45 = vector.broadcast %44 : i32 to vector<1x1024xi32>
    %46 = arith.remsi %42, %45 : vector<1x1024xi32>
    %c0_i32_18 = arith.constant 0 : i32
    %47 = vector.broadcast %c0_i32_18 : i32 to vector<1x1024xi32>
    %48 = arith.cmpi ne, %46, %47 : vector<1x1024xi32>
    %c0_i32_19 = arith.constant 0 : i32
    %49 = vector.broadcast %c0_i32_19 : i32 to vector<1x1024xi32>
    %50 = arith.cmpi slt, %46, %49 : vector<1x1024xi32>
    %c0_i32_20 = arith.constant 0 : i32
    %51 = arith.cmpi slt, %44, %c0_i32_20 : i32
    %52 = vector.broadcast %51 : i1 to vector<1x1024xi1>
    %53 = vector.broadcast %52 : vector<1x1024xi1> to vector<1x1024xi1>
    %54 = arith.xori %50, %53 : vector<1x1024xi1>
    %55 = arith.andi %54, %48 : vector<1x1024xi1>
    %56 = vector.broadcast %44 : i32 to vector<1x1024xi32>
    %57 = arith.addi %46, %56 : vector<1x1024xi32>
    %58 = arith.select %55, %57, %46 : vector<1x1024xi1>, vector<1x1024xi32>
    %c128_i32 = arith.constant 128 : i32
    %59 = vector.broadcast %c128_i32 : i32 to vector<1x1024xi32>
    %60 = arith.subi %58, %59 : vector<1x1024xi32>
    %c16_i32 = arith.constant 16 : i32
    %c0_i32_21 = arith.constant 0 : i32
    %61 = arith.cmpi eq, %c16_i32, %c0_i32_21 : i32
    %c1_i32_22 = arith.constant 1 : i32
    %62 = arith.select %61, %c1_i32_22, %c16_i32 : i32
    %63 = vector.broadcast %62 : i32 to vector<1x1024xi32>
    %64 = arith.remsi %60, %63 : vector<1x1024xi32>
    %c0_i32_23 = arith.constant 0 : i32
    %65 = vector.broadcast %c0_i32_23 : i32 to vector<1x1024xi32>
    %66 = arith.cmpi ne, %64, %65 : vector<1x1024xi32>
    %c0_i32_24 = arith.constant 0 : i32
    %67 = vector.broadcast %c0_i32_24 : i32 to vector<1x1024xi32>
    %68 = arith.cmpi slt, %64, %67 : vector<1x1024xi32>
    %c0_i32_25 = arith.constant 0 : i32
    %69 = arith.cmpi slt, %62, %c0_i32_25 : i32
    %70 = vector.broadcast %69 : i1 to vector<1x1024xi1>
    %71 = vector.broadcast %70 : vector<1x1024xi1> to vector<1x1024xi1>
    %72 = arith.xori %68, %71 : vector<1x1024xi1>
    %73 = arith.andi %72, %66 : vector<1x1024xi1>
    %74 = vector.broadcast %62 : i32 to vector<1x1024xi32>
    %75 = arith.addi %64, %74 : vector<1x1024xi32>
    %76 = arith.select %73, %75, %64 : vector<1x1024xi1>, vector<1x1024xi32>
    %c3_i32 = arith.constant 3 : i32
    %77 = tpu.dynamic_rotate %41 by %c3_i32 dim 1 : vector<2x1024xf32>, i32 -> vector<2x1024xf32>
    %c-3_i32 = arith.constant -3 : i32
    %78 = vector.broadcast %c-3_i32 : i32 to vector<1x1024xi32>
    %79 = arith.addi %76, %78 : vector<1x1024xi32>
    %c0_i32_26 = arith.constant 0 : i32
    %80 = vector.broadcast %c0_i32_26 : i32 to vector<1x1024xi32>
    %81 = arith.cmpi sge, %79, %80 : vector<1x1024xi32>
    %c-3_i32_27 = arith.constant -3 : i32
    %82 = vector.broadcast %c-3_i32_27 : i32 to vector<1x1024xi32>
    %83 = arith.addi %76, %82 : vector<1x1024xi32>
    %c16_i32_28 = arith.constant 16 : i32
    %84 = vector.broadcast %c16_i32_28 : i32 to vector<1x1024xi32>
    %85 = arith.cmpi slt, %83, %84 : vector<1x1024xi32>
    %86 = arith.andi %81, %85 : vector<1x1024xi1>
    %cst_29 = arith.constant 0.000000e+00 : f32
    %87 = vector.shape_cast %86 : vector<1x1024xi1> to vector<1x1024xi1>
    %88 = vector.broadcast %87 : vector<1x1024xi1> to vector<2x1024xi1>
    %89 = vector.broadcast %cst_29 : f32 to vector<2x1024xf32>
    %90 = arith.select %88, %77, %89 : vector<2x1024xi1>, vector<2x1024xf32>
    %c2_i32 = arith.constant 2 : i32
    %91 = tpu.dynamic_rotate %41 by %c2_i32 dim 1 : vector<2x1024xf32>, i32 -> vector<2x1024xf32>
    %c-2_i32 = arith.constant -2 : i32
    %92 = vector.broadcast %c-2_i32 : i32 to vector<1x1024xi32>
    %93 = arith.addi %76, %92 : vector<1x1024xi32>
    %c0_i32_30 = arith.constant 0 : i32
    %94 = vector.broadcast %c0_i32_30 : i32 to vector<1x1024xi32>
    %95 = arith.cmpi sge, %93, %94 : vector<1x1024xi32>
    %c-2_i32_31 = arith.constant -2 : i32
    %96 = vector.broadcast %c-2_i32_31 : i32 to vector<1x1024xi32>
    %97 = arith.addi %76, %96 : vector<1x1024xi32>
    %c16_i32_32 = arith.constant 16 : i32
    %98 = vector.broadcast %c16_i32_32 : i32 to vector<1x1024xi32>
    %99 = arith.cmpi slt, %97, %98 : vector<1x1024xi32>
    %100 = arith.andi %95, %99 : vector<1x1024xi1>
    %cst_33 = arith.constant 0.000000e+00 : f32
    %101 = vector.shape_cast %100 : vector<1x1024xi1> to vector<1x1024xi1>
    %102 = vector.broadcast %101 : vector<1x1024xi1> to vector<2x1024xi1>
    %103 = vector.broadcast %cst_33 : f32 to vector<2x1024xf32>
    %104 = arith.select %102, %91, %103 : vector<2x1024xi1>, vector<2x1024xf32>
    %c1_i32_34 = arith.constant 1 : i32
    %105 = tpu.dynamic_rotate %41 by %c1_i32_34 dim 1 : vector<2x1024xf32>, i32 -> vector<2x1024xf32>
    %c-1_i32 = arith.constant -1 : i32
    %106 = vector.broadcast %c-1_i32 : i32 to vector<1x1024xi32>
    %107 = arith.addi %76, %106 : vector<1x1024xi32>
    %c0_i32_35 = arith.constant 0 : i32
    %108 = vector.broadcast %c0_i32_35 : i32 to vector<1x1024xi32>
    %109 = arith.cmpi sge, %107, %108 : vector<1x1024xi32>
    %c-1_i32_36 = arith.constant -1 : i32
    %110 = vector.broadcast %c-1_i32_36 : i32 to vector<1x1024xi32>
    %111 = arith.addi %76, %110 : vector<1x1024xi32>
    %c16_i32_37 = arith.constant 16 : i32
    %112 = vector.broadcast %c16_i32_37 : i32 to vector<1x1024xi32>
    %113 = arith.cmpi slt, %111, %112 : vector<1x1024xi32>
    %114 = arith.andi %109, %113 : vector<1x1024xi1>
    %cst_38 = arith.constant 0.000000e+00 : f32
    %115 = vector.shape_cast %114 : vector<1x1024xi1> to vector<1x1024xi1>
    %116 = vector.broadcast %115 : vector<1x1024xi1> to vector<2x1024xi1>
    %117 = vector.broadcast %cst_38 : f32 to vector<2x1024xf32>
    %118 = arith.select %116, %105, %117 : vector<2x1024xi1>, vector<2x1024xf32>
    %c0_i32_39 = arith.constant 0 : i32
    %119 = tpu.dynamic_rotate %41 by %c0_i32_39 dim 1 : vector<2x1024xf32>, i32 -> vector<2x1024xf32>
    %c0_i32_40 = arith.constant 0 : i32
    %120 = vector.broadcast %c0_i32_40 : i32 to vector<1x1024xi32>
    %121 = arith.addi %76, %120 : vector<1x1024xi32>
    %c0_i32_41 = arith.constant 0 : i32
    %122 = vector.broadcast %c0_i32_41 : i32 to vector<1x1024xi32>
    %123 = arith.cmpi sge, %121, %122 : vector<1x1024xi32>
    %c0_i32_42 = arith.constant 0 : i32
    %124 = vector.broadcast %c0_i32_42 : i32 to vector<1x1024xi32>
    %125 = arith.addi %76, %124 : vector<1x1024xi32>
    %c16_i32_43 = arith.constant 16 : i32
    %126 = vector.broadcast %c16_i32_43 : i32 to vector<1x1024xi32>
    %127 = arith.cmpi slt, %125, %126 : vector<1x1024xi32>
    %128 = arith.andi %123, %127 : vector<1x1024xi1>
    %cst_44 = arith.constant 0.000000e+00 : f32
    %129 = vector.shape_cast %128 : vector<1x1024xi1> to vector<1x1024xi1>
    %130 = vector.broadcast %129 : vector<1x1024xi1> to vector<2x1024xi1>
    %131 = vector.broadcast %cst_44 : f32 to vector<2x1024xf32>
    %132 = arith.select %130, %119, %131 : vector<2x1024xi1>, vector<2x1024xf32>
    %c1023_i32 = arith.constant 1023 : i32
    %133 = tpu.dynamic_rotate %41 by %c1023_i32 dim 1 : vector<2x1024xf32>, i32 -> vector<2x1024xf32>
    %c1_i32_45 = arith.constant 1 : i32
    %134 = vector.broadcast %c1_i32_45 : i32 to vector<1x1024xi32>
    %135 = arith.addi %76, %134 : vector<1x1024xi32>
    %c0_i32_46 = arith.constant 0 : i32
    %136 = vector.broadcast %c0_i32_46 : i32 to vector<1x1024xi32>
    %137 = arith.cmpi sge, %135, %136 : vector<1x1024xi32>
    %c1_i32_47 = arith.constant 1 : i32
    %138 = vector.broadcast %c1_i32_47 : i32 to vector<1x1024xi32>
    %139 = arith.addi %76, %138 : vector<1x1024xi32>
    %c16_i32_48 = arith.constant 16 : i32
    %140 = vector.broadcast %c16_i32_48 : i32 to vector<1x1024xi32>
    %141 = arith.cmpi slt, %139, %140 : vector<1x1024xi32>
    %142 = arith.andi %137, %141 : vector<1x1024xi1>
    %cst_49 = arith.constant 0.000000e+00 : f32
    %143 = vector.shape_cast %142 : vector<1x1024xi1> to vector<1x1024xi1>
    %144 = vector.broadcast %143 : vector<1x1024xi1> to vector<2x1024xi1>
    %145 = vector.broadcast %cst_49 : f32 to vector<2x1024xf32>
    %146 = arith.select %144, %133, %145 : vector<2x1024xi1>, vector<2x1024xf32>
    %c1022_i32 = arith.constant 1022 : i32
    %147 = tpu.dynamic_rotate %41 by %c1022_i32 dim 1 : vector<2x1024xf32>, i32 -> vector<2x1024xf32>
    %c2_i32_50 = arith.constant 2 : i32
    %148 = vector.broadcast %c2_i32_50 : i32 to vector<1x1024xi32>
    %149 = arith.addi %76, %148 : vector<1x1024xi32>
    %c0_i32_51 = arith.constant 0 : i32
    %150 = vector.broadcast %c0_i32_51 : i32 to vector<1x1024xi32>
    %151 = arith.cmpi sge, %149, %150 : vector<1x1024xi32>
    %c2_i32_52 = arith.constant 2 : i32
    %152 = vector.broadcast %c2_i32_52 : i32 to vector<1x1024xi32>
    %153 = arith.addi %76, %152 : vector<1x1024xi32>
    %c16_i32_53 = arith.constant 16 : i32
    %154 = vector.broadcast %c16_i32_53 : i32 to vector<1x1024xi32>
    %155 = arith.cmpi slt, %153, %154 : vector<1x1024xi32>
    %156 = arith.andi %151, %155 : vector<1x1024xi1>
    %cst_54 = arith.constant 0.000000e+00 : f32
    %157 = vector.shape_cast %156 : vector<1x1024xi1> to vector<1x1024xi1>
    %158 = vector.broadcast %157 : vector<1x1024xi1> to vector<2x1024xi1>
    %159 = vector.broadcast %cst_54 : f32 to vector<2x1024xf32>
    %160 = arith.select %158, %147, %159 : vector<2x1024xi1>, vector<2x1024xf32>
    %c1021_i32 = arith.constant 1021 : i32
    %161 = tpu.dynamic_rotate %41 by %c1021_i32 dim 1 : vector<2x1024xf32>, i32 -> vector<2x1024xf32>
    %c3_i32_55 = arith.constant 3 : i32
    %162 = vector.broadcast %c3_i32_55 : i32 to vector<1x1024xi32>
    %163 = arith.addi %76, %162 : vector<1x1024xi32>
    %c0_i32_56 = arith.constant 0 : i32
    %164 = vector.broadcast %c0_i32_56 : i32 to vector<1x1024xi32>
    %165 = arith.cmpi sge, %163, %164 : vector<1x1024xi32>
    %c3_i32_57 = arith.constant 3 : i32
    %166 = vector.broadcast %c3_i32_57 : i32 to vector<1x1024xi32>
    %167 = arith.addi %76, %166 : vector<1x1024xi32>
    %c16_i32_58 = arith.constant 16 : i32
    %168 = vector.broadcast %c16_i32_58 : i32 to vector<1x1024xi32>
    %169 = arith.cmpi slt, %167, %168 : vector<1x1024xi32>
    %170 = arith.andi %165, %169 : vector<1x1024xi1>
    %cst_59 = arith.constant 0.000000e+00 : f32
    %171 = vector.shape_cast %170 : vector<1x1024xi1> to vector<1x1024xi1>
    %172 = vector.broadcast %171 : vector<1x1024xi1> to vector<2x1024xi1>
    %173 = vector.broadcast %cst_59 : f32 to vector<2x1024xf32>
    %174 = arith.select %172, %161, %173 : vector<2x1024xi1>, vector<2x1024xf32>
    %cst_60 = arith.constant 0.000000e+00 : f32
    %175 = vector.broadcast %cst_60 : f32 to vector<2x1024xf32>
    %176 = tpu.concatenate %90, %104, %118, %132, %146, %160, %174, %175 in 0 : vector<2x1024xf32>, vector<2x1024xf32>, vector<2x1024xf32>, vector<2x1024xf32>, vector<2x1024xf32>, vector<2x1024xf32>, vector<2x1024xf32>, vector<2x1024xf32> -> vector<16x1024xf32>
    %c0_61 = arith.constant 0 : index
    %c0_62 = arith.constant 0 : index
    %177 = vector.load %arg4[%c0_61, %c0_62] : memref<16x7xf32, #tpu.memory_space<vmem>>, vector<16x7xf32>
    %cst_63 = arith.constant 0.000000e+00 : f32
    %178 = vector.broadcast %cst_63 : f32 to vector<16x1024xf32>
    %179 = vector.extract_strided_slice %177 {offsets = [0, 0], sizes = [16, 1], strides = [1, 1]} : vector<16x7xf32> to vector<16x1xf32>
    %c48_i32 = arith.constant 48 : i32
    %180 = tpu.dynamic_rotate %176 by %c48_i32 dim 1 : vector<16x1024xf32>, i32 -> vector<16x1024xf32>
    %181 = vector.broadcast %179 : vector<16x1xf32> to vector<16x1024xf32>
    %182 = arith.mulf %181, %180 : vector<16x1024xf32>
    %183 = arith.addf %178, %182 : vector<16x1024xf32>
    %184 = vector.extract_strided_slice %177 {offsets = [0, 1], sizes = [16, 1], strides = [1, 1]} : vector<16x7xf32> to vector<16x1xf32>
    %c32_i32 = arith.constant 32 : i32
    %185 = tpu.dynamic_rotate %176 by %c32_i32 dim 1 : vector<16x1024xf32>, i32 -> vector<16x1024xf32>
    %186 = vector.broadcast %184 : vector<16x1xf32> to vector<16x1024xf32>
    %187 = arith.mulf %186, %185 : vector<16x1024xf32>
    %188 = arith.addf %183, %187 : vector<16x1024xf32>
    %189 = vector.extract_strided_slice %177 {offsets = [0, 2], sizes = [16, 1], strides = [1, 1]} : vector<16x7xf32> to vector<16x1xf32>
    %c16_i32_64 = arith.constant 16 : i32
    %190 = tpu.dynamic_rotate %176 by %c16_i32_64 dim 1 : vector<16x1024xf32>, i32 -> vector<16x1024xf32>
    %191 = vector.broadcast %189 : vector<16x1xf32> to vector<16x1024xf32>
    %192 = arith.mulf %191, %190 : vector<16x1024xf32>
    %193 = arith.addf %188, %192 : vector<16x1024xf32>
    %194 = vector.extract_strided_slice %177 {offsets = [0, 3], sizes = [16, 1], strides = [1, 1]} : vector<16x7xf32> to vector<16x1xf32>
    %c0_i32_65 = arith.constant 0 : i32
    %195 = tpu.dynamic_rotate %176 by %c0_i32_65 dim 1 : vector<16x1024xf32>, i32 -> vector<16x1024xf32>
    %196 = vector.broadcast %194 : vector<16x1xf32> to vector<16x1024xf32>
    %197 = arith.mulf %196, %195 : vector<16x1024xf32>
    %198 = arith.addf %193, %197 : vector<16x1024xf32>
    %199 = vector.extract_strided_slice %177 {offsets = [0, 4], sizes = [16, 1], strides = [1, 1]} : vector<16x7xf32> to vector<16x1xf32>
    %c1008_i32 = arith.constant 1008 : i32
    %200 = tpu.dynamic_rotate %176 by %c1008_i32 dim 1 : vector<16x1024xf32>, i32 -> vector<16x1024xf32>
    %201 = vector.broadcast %199 : vector<16x1xf32> to vector<16x1024xf32>
    %202 = arith.mulf %201, %200 : vector<16x1024xf32>
    %203 = arith.addf %198, %202 : vector<16x1024xf32>
    %204 = vector.extract_strided_slice %177 {offsets = [0, 5], sizes = [16, 1], strides = [1, 1]} : vector<16x7xf32> to vector<16x1xf32>
    %c992_i32 = arith.constant 992 : i32
    %205 = tpu.dynamic_rotate %176 by %c992_i32 dim 1 : vector<16x1024xf32>, i32 -> vector<16x1024xf32>
    %206 = vector.broadcast %204 : vector<16x1xf32> to vector<16x1024xf32>
    %207 = arith.mulf %206, %205 : vector<16x1024xf32>
    %208 = arith.addf %203, %207 : vector<16x1024xf32>
    %209 = vector.extract_strided_slice %177 {offsets = [0, 6], sizes = [16, 1], strides = [1, 1]} : vector<16x7xf32> to vector<16x1xf32>
    %c976_i32 = arith.constant 976 : i32
    %210 = tpu.dynamic_rotate %176 by %c976_i32 dim 1 : vector<16x1024xf32>, i32 -> vector<16x1024xf32>
    %211 = vector.broadcast %209 : vector<16x1xf32> to vector<16x1024xf32>
    %212 = arith.mulf %211, %210 : vector<16x1024xf32>
    %213 = arith.addf %208, %212 : vector<16x1024xf32>
    %cst_66 = arith.constant dense<0.000000e+00> : vector<1024xf32>
    %214 = vector.multi_reduction <add>, %213, %cst_66 [0] : vector<16x1024xf32> to vector<1024xf32>
    %215 = vector.shape_cast %214 : vector<1024xf32> to vector<1x1024xf32>
    %216 = arith.negf %215 : vector<1x1024xf32>
    %217 = math.exp %216 : vector<1x1024xf32>
    %cst_67 = arith.constant 1.000000e+00 : f32
    %218 = vector.broadcast %cst_67 : f32 to vector<1x1024xf32>
    %219 = arith.addf %218, %217 : vector<1x1024xf32>
    %220 = arith.divf %218, %219 : vector<1x1024xf32>
    %221 = vector.extract_strided_slice %220 {offsets = [0, 128], sizes = [1, 256], strides = [1, 1]} : vector<1x1024xf32> to vector<1x256xf32>
    %222 = vector.extract_strided_slice %23 {offsets = [0, 0], sizes = [16, 256], strides = [1, 1]} : vector<32x256xf32> to vector<16x256xf32>
    %223 = vector.broadcast %221 : vector<1x256xf32> to vector<16x256xf32>
    %224 = arith.mulf %222, %223 : vector<16x256xf32>
    %c0_68 = arith.constant 0 : index
    %c0_69 = arith.constant 0 : index
    %225 = vector.load %arg5[%c0_68, %c0_69] : memref<32x256xf32, #tpu.memory_space<vmem>>, vector<16x256xf32>
    tpu.vector_store %arg5[%c0_68, %c0_69], %224 {strides = array<i32>} : memref<32x256xf32, #tpu.memory_space<vmem>>, vector<16x256xf32>,
    %226 = vector.extract_strided_slice %220 {offsets = [0, 640], sizes = [1, 256], strides = [1, 1]} : vector<1x1024xf32> to vector<1x256xf32>
    %227 = vector.extract_strided_slice %23 {offsets = [16, 0], sizes = [16, 256], strides = [1, 1]} : vector<32x256xf32> to vector<16x256xf32>
    %228 = vector.broadcast %226 : vector<1x256xf32> to vector<16x256xf32>
    %229 = arith.mulf %227, %228 : vector<16x256xf32>
    %c16 = arith.constant 16 : index
    %c0_70 = arith.constant 0 : index
    %230 = vector.load %arg5[%c16, %c0_70] : memref<32x256xf32, #tpu.memory_space<vmem>>, vector<16x256xf32>
    tpu.vector_store %arg5[%c16, %c0_70], %229 {strides = array<i32>} : memref<32x256xf32, #tpu.memory_space<vmem>>, vector<16x256xf32>,
    return
  }
  func.func @transform_0(%arg0: i32) -> (i32, i32) {
    %c0_i32 = arith.constant 0 : i32
    %c0_i32_0 = arith.constant 0 : i32
    %c0_i32_1 = arith.constant 0 : i32
    return %c0_i32, %c0_i32_0 : i32, i32
  }
  func.func @transform_1(%arg0: i32) -> (i32, i32) {
    %c0_i32 = arith.constant 0 : i32
    %c0_i32_0 = arith.constant 0 : i32
    %c0_i32_1 = arith.constant 0 : i32
    return %c0_i32, %c0_i32_0 : i32, i32
  }
  func.func @transform_2(%arg0: i32) -> (i32, i32) {
    %c0_i32 = arith.constant 0 : i32
    %c0_i32_0 = arith.constant 0 : i32
    %c0_i32_1 = arith.constant 0 : i32
    return %c0_i32, %c0_i32_0 : i32, i32
  }
  func.func @transform_3(%arg0: i32) -> (i32, i32) {
    %c0_i32 = arith.constant 0 : i32
    %c0_i32_0 = arith.constant 0 : i32
    %c0_i32_1 = arith.constant 0 : i32
    return %c0_i32, %c0_i32_0 : i32, i32
  }
  func.func @transform_4(%arg0: i32) -> (i32, i32) {
    %c0_i32 = arith.constant 0 : i32
    %c0_i32_0 = arith.constant 0 : i32
    %c0_i32_1 = arith.constant 0 : i32
    return %c0_i32, %c0_i32_0 : i32, i32
  }
}

</mosaic_0001>

<bundles_post_ra>
// kernel: cbam_forward.1
= control target key start
LH: loop header
LB: loop body
LE: loop exit
PB: predicated region body
PF: predicated region fallthrough
CT: control target
= control target key end

     0   :  { %v1794_v16 = vmov 0.0|0.0   ;;  %vm1795_vm0 = vmmov 0   ;;  %v1796_v17 = vmov 0.0   ;;  %vm54_vm1 = vcmask 7168   ;;  %s1797_s8 = smov 3   ;;  %s1801_s9 = smov 2   ;;  %s3202_s0 = inlined_call_operand.vmem [shape: f32[32,256], index: 0, kind: input, shape index: {}]   ;;  %s3203_s1 = inlined_call_operand.vmem [shape: f32[4,32], index: 1, kind: input, shape index: {}]   ;;  %s3204_s2 = inlined_call_operand.vmem [shape: f32[32,4], index: 2, kind: input, shape index: {}]   ;;  %s3205_s3 = inlined_call_operand.vmem [shape: f32[16,7], index: 3, kind: input, shape index: {}]   ;;  %s3206_s4 = inlined_call_operand.vmem [shape: f32[32,256], index: 4, kind: output, shape index: {}]  }
   0x1   :  { %v1844_v0 = vld [vmem:[%s3202_s0] sm:$0xff]  ;;  %v1849_v1 = vld [vmem:[%s3202_s0 + $0x8] sm:$0xff]  ;;  %v1854_v2 = vld [vmem:[%s3202_s0 + $0x10] sm:$0xff]  ;;  %1689 = vmatprep.subr.bf16.mxu0 %v1794_v16  ;;  %1678 = vmatprep.mubr.msk.f32.mxu0 %vm1795_vm0, %v1796_v17  ;;  %vm60_vm2 = vcmask 261120   ;;  %vm3207_vm3 = vcmask 31744   ;;  %v1798_v39 = vmov 0   ;;  %v364_v44 = vlaneseq }
   0x2   :  { %v42_v3 = vmax.f32 %v1844_v0, %v1849_v1  ;;  %v25_v4 = vadd.f32 %v1849_v1, %v1844_v0  ;;  %v1863_v5 = vld [vmem:[%s3202_s0 + $0x18] sm:$0xff]  ;;  %v1872_v8 = vld [vmem:[%s3202_s0 + $0x30] sm:$0xff]  ;;  %v1882_v10 = vld [vmem:[%s3202_s0 + $0x20] sm:$0xff]  ;;  %1722 = vset.pattern.permute.xlu1 %v1798_v39  ;;  %v1799_v42 = vmov 1   ;;  %s1802_s10 = smov 1   ;;  %s1803_s11 = smov 126  }
   0x3   :  { %v45_v6 = vmax.f32 %v1854_v2, %v1863_v5  ;;  %v28_v7 = vadd.f32 %v1863_v5, %v1854_v2  ;;  %v1877_v9 = vld [vmem:[%s3202_s0 + $0x38] sm:$0xff]  ;;  %v1887_v11 = vld [vmem:[%s3202_s0 + $0x28] sm:$0xff]  ;;  %v59_v36 = vld [vmem:[%s3203_s1] sm:$0xf]  ;;  %1728 = vset.pattern.permute.xlu0 %v1799_v42  ;;  %s1800_s1 = smov 127   ;;  %s1804_s12 = smov 125  }
   0x4   :  { %43 = vmax.xlane.f32.xlu1 %v42_v3  ;;  %26 = vadd.xlane.f32.xlu0 %v25_v4  ;;  %v34_v12 = vadd.f32 %v1877_v9, %v1872_v8  ;;  %v31_v13 = vadd.f32 %v1887_v11, %v1882_v10  ;;  %v51_v14 = vmax.f32 %v1872_v8, %v1877_v9  ;;  %v135_v37 = vld [vmem:[%s3204_s2] sm:$0xff]  ;;  %v1930_v45 = vand.u32 127, %v364_v44  ;;  %s1805_s21 = smov 32   ;;  %s1807_s24 = smov 16  }
   0x5   :  { %v48_v15 = vmax.f32 %v1882_v10, %v1887_v11  ;;  %1683 = vmatprep.mubr.msk.f32.mxu1 %vm3207_vm3, %v135_v37  ;;  %v1927_v43 = vld [vmem:[%s3205_s3] sm:$0xff]  ;;  %s1814_s25 = smov 96   ;;  %s1815_s26 = smov 80  }
   0x6   :  { %v369_v46 = vadd.s32 512, %v1930_v45  ;;  %v377_v47 = vand.u32 511, %v1930_v45 }
   0x8   :  { %46 = vmax.xlane.f32.xlu1 %v45_v6  ;;  %29 = vadd.xlane.f32.xlu0 %v28_v7  ;;  %v405_v48 = vand.u32 511, %v369_v46  ;;  %v1648_v49 = vadd.s32 4294967168, %v377_v47  ;;  %v1197_v46 = vld [vmem:[%s3205_s3 + $0x8] sm:$0xff]  ;;  %v1808_v47 = vmov 2   ;;  %s1813_s3 = smov 112  }
   0xa   :  { %v1652_v50 = vadd.s32 4294967168, %v405_v48  ;;  %v478_v51 = vsub.s32 0, %v1648_v49  ;;  %v1809_v48 = vmov 4   ;;  %v1810_v49 = vmov 3  }
   0xc   :  { %35 = vadd.xlane.f32.xlu1 %v34_v12  ;;  %32 = vadd.xlane.f32.xlu0 %v31_v13  ;;  %v506_v52 = vsub.s32 0, %v1652_v50  ;;  %v481_v53 = vand.u32 15, %v478_v51  ;;  %v1811_v50 = vmov 5   ;;  %v1812_v51 = vmov 6  }
   0xe   :  { %v509_v54 = vand.u32 15, %v506_v52  ;;  %v482_v55 = vsub.s32 0, %v481_v53  ;;  %v368_v52 = vadd.s32 384, %v1930_v45  ;;  %v372_v53 = vadd.s32 896, %v1930_v45 }
  0x10   :  { %52 = vmax.xlane.f32.xlu1 %v51_v14  ;;  %49 = vmax.xlane.f32.xlu0 %v48_v15  ;;  %v510_v56 = vsub.s32 0, %v509_v54  ;;  %vm533_vm4 = vcmp.ne.s32.totalorder %v482_v55, 0  ;;  %vm541_vm5 = vcmp.lt.s32.totalorder %v482_v55, 0  ;;  %v557_v57 = vadd.s32 16, %v482_v55 }
  0x11   :  { %vm549_vm8 = vmand %vm541_vm5, %vm533_vm4  ;;  %v398_v54 = vand.u32 511, %v368_v52 }
  0x12   :  { %vm537_vm6 = vcmp.ne.s32.totalorder %v510_v56, 0  ;;  %vm545_vm7 = vcmp.lt.s32.totalorder %v510_v56, 0  ;;  %v561_v58 = vadd.s32 16, %v510_v56  ;;  %v1934_v59 = vsel %vm549_vm8, %v557_v57, %v482_v55 }
  0x13   :  { %vm553_vm9 = vmand %vm545_vm7, %vm537_vm6  ;;  %v590_v61 = vadd.s32 4294967293, %v1934_v59  ;;  %v663_v62 = vadd.s32 4294967294, %v1934_v59  ;;  %v736_v4 = vadd.s32 4294967295, %v1934_v59  ;;  %v426_v55 = vand.u32 511, %v372_v53 }
  0x14   :  { %v1936_v60 = vsel %vm553_vm9, %v561_v58, %v510_v56  ;;  %v1651_v56 = vadd.s32 4294967168, %v398_v54 }
  0x15   :  { %v667_v63 = vadd.s32 4294967294, %v1936_v60  ;;  %v594_v3 = vadd.s32 4294967293, %v1936_v60  ;;  %vm598_vm10 = vcmp.ge.s32.totalorder %v590_v61, 0  ;;  %vm606_vm11 = vcmp.lt.s32.totalorder %v590_v61, 16 }
  0x16   :  { %vm671_vm12 = vcmp.ge.s32.totalorder %v663_v62, 0  ;;  %vm679_vm13 = vcmp.lt.s32.totalorder %v663_v62, 16  ;;  %v740_v6 = vadd.s32 4294967295, %v1936_v60  ;;  %vm744_vm6 = vcmp.ge.s32.totalorder %v736_v4, 0 }
  0x17   :  { %vm675_vm14 = vcmp.ge.s32.totalorder %v667_v63, 0  ;;  %vm683_vm15 = vcmp.lt.s32.totalorder %v667_v63, 16  ;;  %vm602_vm0 = vcmp.ge.s32.totalorder %v594_v3, 0  ;;  %vm1950_vm4 = vmand %vm671_vm12, %vm679_vm13  ;;  %vm752_vm7 = vcmp.lt.s32.totalorder %v736_v4, 16 }
  0x18   :  { %vm1954_vm5 = vmand %vm675_vm14, %vm683_vm15  ;;  %vm748_vm9 = vcmp.ge.s32.totalorder %v740_v6, 0  ;;  %vm756_vm3 = vcmp.lt.s32.totalorder %v740_v6, 16  ;;  %vm3210_vm12 = vcmask 1041408   ;;  %vm3243_vm14 = vcmask 31744  }
  0x19   :  { %vm1985_vm13 = vmand %vm748_vm9, %vm756_vm3  ;;  %vm3208_vm15 = vcmask 1045504   ;;  %v1655_v57 = vadd.s32 4294967168, %v426_v55  ;;  %v502_v58 = vand.u32 15, %v1651_v56 }
  0x1a   :  { %vm3244_vm3 = vmmov %vm3243_vm14 }
  0x1b   :  { %v530_v61 = vand.u32 15, %v1655_v57  ;;  %v560_v62 = vadd.s32 16, %v502_v58 }
  0x1d   :  { %v564_v63 = vadd.s32 16, %v530_v61 }
  0x21   :  { %573 = vrot.lane.b32.xlu1 %v1796_v17, %s1797_s8 }
  0x25   :  { %646 = vrot.lane.b32.xlu1 %v1796_v17, %s1801_s9 }
  0x29   :  { %816 = vrot.lane.b32.xlu1 %v1796_v17, %s1800_s1 }
  0x2d   :  { %962 = vrot.lane.b32.xlu1 %v1796_v17, %s1804_s12 }
  0x31   :  { %1233 = vperm.xlu1 %1722, %v1927_v43  }
  0x35   :  { %1729 = vset.pattern.permute.xlu1 %v1799_v42 }
  0x91   :  { %v44_v18 = vpop.xlane.xlu1 %43  ;;  %v27_v19 = vpop.xlane.xlu0 %26 }
  0x92   :  { %v38_v20 = vmul.f32 0.00390625, %v27_v19 }
  0x94   :  { %v55_v24 = vsel %vm54_vm1, %v38_v20, %v44_v18 }
  0x95   :  { %v47_v21 = vpop.xlane.xlu1 %46  ;;  %v30_v22 = vpop.xlane.xlu0 %29 }
  0x96   :  { %v39_v23 = vmul.f32 0.00390625, %v30_v22 }
  0x98   :  { %v56_v25 = vsel %vm54_vm1, %v39_v23, %v47_v21  ;;  %v136_v23 = vld [vmem:[%s3204_s2 + $0x8] sm:$0xff] }
  0x99   :  { %v36_v26 = vpop.xlane.xlu1 %35  ;;  %v33_v27 = vpop.xlane.xlu0 %32  ;;  %v1690_v28 = vpack.c.bf16 %v56_v25, %v55_v24 }
  0x9a   :  { %v41_v29 = vmul.f32 0.00390625, %v36_v26  ;;  %v40_v30 = vmul.f32 0.00390625, %v33_v27 }
  0x9b   :  { %1691 = vmatpush3.bf16.msra.mxu0 %v1690_v28 }
  0x9c   :  { %1692 = vmatprep.subr.bf16.mxu0 %v1794_v16 }
  0x9d   :  { %v53_v31 = vpop.xlane.xlu1 %52  ;;  %v50_v32 = vpop.xlane.xlu0 %49 }
  0x9e   :  { %v58_v33 = vsel %vm54_vm1, %v41_v29, %v53_v31  ;;  %v57_v34 = vsel %vm54_vm1, %v40_v30, %v50_v32  ;;  %vm610_vm1 = vcmp.lt.s32.totalorder %v594_v3, 16  ;;  %v137_v29 = vld [vmem:[%s3204_s2 + $0x10] sm:$0xff]  ;;  %v1997_v31 = vrot.slane %v1796_v17, 2 }
  0x9f   :  { %v1693_v35 = vpack.c.bf16 %v58_v33, %v57_v34  ;;  %vm1958_vm8 = vmand %vm602_vm0, %vm610_vm1  ;;  %vm536_vm1 = vcmp.ne.s32.totalorder %v502_v58, 0 }
  0xa0   :  { %vm3245_vm0 = vmmov %vm3244_vm3 }
  0xa1   :  { %1694 = vmatpush3.bf16.msra.mxu0 %v1693_v35  ;;  %v1944_v7 = vpop.permute.xlu1 %573 }
  0xa2   :  { %v642_v25 = vsel %vm1958_vm8, %v1944_v7, 0.0 }
  0xa4   :  { %1679 = vmatmul.mubr.msk.f32.vlgmr.msra.gmra.mrb[0].mxu0 %vm60_vm2, %v59_v36  ;;  %vm1946_vm2 = vmand %vm598_vm10, %vm606_vm11  ;;  %vm3209_vm10 = vcmask 1043456  }
  0xa5   :  { %v1962_v18 = vpop.permute.xlu1 %646  ;;  %vm1972_vm11 = vmand %vm744_vm6, %vm752_vm7  ;;  %v638_v24 = vsel %vm1946_vm2, %v1944_v7, 0.0  ;;  %vm540_vm2 = vcmp.ne.s32.totalorder %v530_v61, 0 }
  0xa6   :  { %v711_v20 = vsel %vm1950_vm4, %v1962_v18, 0.0  ;;  %v715_v21 = vsel %vm1954_vm5, %v1962_v18, 0.0  ;;  %vm544_vm4 = vcmp.lt.s32.totalorder %v502_v58, 0  ;;  %vm548_vm5 = vcmp.lt.s32.totalorder %v530_v61, 0 }
  0xa7   :  { %v1043_v27 = vrot.slane %v711_v20, 6  ;;  %v1047_v28 = vrot.slane %v715_v21, 6  ;;  %vm552_vm6 = vmand %vm544_vm4, %vm536_vm1 }
  0xa8   :  { %vm556_vm7 = vmand %vm548_vm5, %vm540_vm2 }
  0xa9   :  { %v1147_v34 = vsel %vm3210_vm12, %v638_v24, %v1043_v27  ;;  %v1151_v35 = vsel %vm3210_vm12, %v642_v25, %v1047_v28  ;;  %v2041_v3 = vsel %vm556_vm7, %v564_v63, %v530_v61 }
  0xaa   :  { %v913_v6 = vadd.s32 2, %v2041_v3  ;;  %v840_v14 = vadd.s32 1, %v2041_v3  ;;  %v986_v15 = vadd.s32 3, %v2041_v3 }
  0xac   :  { %vm921_vm9 = vcmp.ge.s32.totalorder %v913_v6, 0  ;;  %vm856_vm1 = vcmp.lt.s32.totalorder %v840_v14, 16 }
 0x177   :  { %v1907_v38 = vpop.f32.mrb[0].mxu0 }
 0x178   :  { %v134_v40 = vmax.f32 %v1907_v38, 0.0  ;;  %v1680_v41 = vpop.f32.mrb[1].mxu0 }
 0x17a   :  { %140 = vrot.lane.b32.xlu0 %v134_v40, %s1800_s1 }
 0x17e   :  { %719 = vrot.lane.b32.xlu0 %v1796_v17, %s1802_s10 }
 0x182   :  { %889 = vrot.lane.b32.xlu0 %v1796_v17, %s1803_s11  ;;  %v138_v17 = vld [vmem:[%s3204_s2 + $0x18] sm:$0xff]  ;;  %s1806_s2 = smov 48  }
 0x1ec   :  { %v141_v16 = vpop.permute.xlu0 %140 }
 0x1ed   :  { %v143_v19 = vadd.f32 %v141_v16, %v134_v40 }
 0x1ef   :  { %1681 = vmatprep.subr.msk.mxu1 %vm3209_vm10, %v143_v19 }
 0x1f0   :  { %1682 = vmatpush3.msk.msra.mxu1 %vm3209_vm10, %v143_v19  ;;  %v1994_v30 = vpop.permute.xlu0 %719 }
 0x1f1   :  { %1684 = vmatmul.mubr.msk.f32.vlgmr.msra.gmra.mrb[0].mxu1 %vm3243_vm14, %v136_v23  ;;  %v784_v32 = vsel %vm1972_vm11, %v1994_v30, 0.0  ;;  %v788_v33 = vsel %vm1985_vm13, %v1994_v30, 0.0  ;;  %vm929_vm13 = vcmp.lt.s32.totalorder %v913_v6, 16 }
 0x1f2   :  { %1686 = vmatprep.mubr.msk.f32.mxu1 %vm3244_vm3, %v137_v29  ;;  %v1067_v36 = vrot.slane %v784_v32, 4  ;;  %v1071_v37 = vrot.slane %v788_v33, 4  ;;  %vm848_vm3 = vcmp.ge.s32.totalorder %v840_v14, 0 }
 0x1f3   :  { %vm2058_vm7 = vmand %vm848_vm3, %vm856_vm1 }
 0x1f4   :  { %v1155_v38 = vsel %vm3209_vm10, %v1147_v34, %v1067_v36  ;;  %v1159_v40 = vsel %vm3209_vm10, %v1151_v35, %v1071_v37  ;;  %v2049_v16 = vpop.permute.xlu0 %889 }
 0x1f5   :  { %1687 = vmatmul.mubr.msk.f32.gmra.mrb[2].mxu1 %vm3245_vm0, %v138_v17  ;;  %v1164_v41 = vsel %vm3208_vm15, %v1155_v38, %v1997_v31  ;;  %v1168_v42 = vsel %vm3208_vm15, %v1159_v40, %v1997_v31  ;;  %vm994_vm15 = vcmp.ge.s32.totalorder %v986_v15, 0 }
 0x1f6   :  { %v1723_v44 = vpack.i.bf16 %v1168_v42, %v1164_v41 }
 0x1f8   :  { %1724 = vrot.lane.b32.xlu1 %v1723_v44, %s1805_s21  ;;  %1718 = vrot.lane.b32.xlu0 %v1723_v44, %s1806_s2 }
 0x1fc   :  { %1295 = vperm.xlu1 %1729, %v1197_v46   ;;  %1291 = vperm.xlu0 %1728, %v1927_v43  }
 0x200   :  { %1731 = vrot.lane.b32.xlu1 %v1723_v44, %s1807_s24  ;;  %1736 = vset.pattern.permute.xlu0 %v1808_v47 }
 0x201   :  { %1735 = vset.pattern.permute.xlu1 %v1808_v47  ;;  %1352 = vperm.xlu0 %1736, %v1197_v46  }
 0x204   :  { %1348 = vperm.xlu1 %1735, %v1927_v43  }
 0x205   :  { %1738 = vset.pattern.permute.xlu0 %v1809_v48 }
 0x206   :  { %1429 = vperm.xlu0 %1738, %v1927_v43  }
 0x208   :  { %1737 = vset.pattern.permute.xlu1 %v1810_v49 }
 0x209   :  { %1372 = vperm.xlu1 %1737, %v1927_v43  }
 0x20a   :  { %1740 = vset.pattern.permute.xlu0 %v1811_v50 }
 0x20b   :  { %1486 = vperm.xlu0 %1740, %v1927_v43  }
 0x20d   :  { %1376 = vperm.xlu1 %1737, %v1197_v46  }
 0x20f   :  { %1743 = vset.pattern.permute.xlu0 %v1812_v51 }
 0x210   :  { %1547 = vperm.xlu0 %1743, %v1197_v46  }
 0x211   :  { %1739 = vset.pattern.permute.xlu1 %v1809_v48 }
 0x212   :  { %1433 = vperm.xlu1 %1739, %v1197_v46  }
 0x214   :  { %1744 = vset.pattern.permute.xlu0 %v1798_v39 }
 0x215   :  { %1238 = vperm.xlu0 %1744, %v1197_v46  }
 0x216   :  { %1741 = vset.pattern.permute.xlu1 %v1811_v50 }
 0x217   :  { %1490 = vperm.xlu1 %1741, %v1197_v46  }
 0x21b   :  { %1742 = vset.pattern.permute.xlu1 %v1812_v51 }
 0x21c   :  { %1543 = vperm.xlu1 %1742, %v1927_v43   ;;  %v2037_v43 = vpop.permute.xlu1 %816 }
 0x21d   :  { %v888_v25 = vsel %vm2058_vm7, %v2037_v43, 0.0 }
 0x220   :  { %1760 = vset.pattern.permute.xlu1 %v1798_v39  ;;  %v2039_v39 = vsel %vm552_vm6, %v560_v62, %v502_v58  ;;  %v2056_v21 = vpop.permute.xlu1 %962 }
 0x221   :  { %v909_v4 = vadd.s32 2, %v2039_v39  ;;  %v982_v12 = vadd.s32 3, %v2039_v39  ;;  %v836_v13 = vadd.s32 1, %v2039_v39 }
 0x223   :  { %vm917_vm8 = vcmp.ge.s32.totalorder %v909_v4, 0  ;;  %vm925_vm11 = vcmp.lt.s32.totalorder %v909_v4, 16  ;;  %vm844_vm14 = vcmp.ge.s32.totalorder %v836_v13, 0  ;;  %vm852_vm0 = vcmp.lt.s32.totalorder %v836_v13, 16 }
 0x224   :  { %vm933_vm2 = vmand %vm917_vm8, %vm925_vm11  ;;  %vm990_vm5 = vcmp.ge.s32.totalorder %v982_v12, 0  ;;  %vm998_vm6 = vcmp.lt.s32.totalorder %v982_v12, 16  ;;  %vm1002_vm8 = vcmp.lt.s32.totalorder %v986_v15, 16  ;;  %v2083_v12 = vpop.permute.xlu1 %1233 }
 0x225   :  { %vm2051_vm4 = vmand %vm844_vm14, %vm852_vm0  ;;  %v957_v20 = vsel %vm933_vm2, %v2049_v16, 0.0  ;;  %3252 = vst [vmem:[#allocation2_spill] sm:$0xff] %v2083_v12 }
 0x226   :  { %v884_v23 = vsel %vm2051_vm4, %v2037_v43, 0.0  ;;  %v1109_v24 = vrot.slane %v957_v20, 6  ;;  %vm937_vm11 = vmand %vm921_vm9, %vm929_vm13  ;;  %vm3250_vm9 = vcmask 1045504  }
 0x227   :  { %v961_v26 = vsel %vm937_vm11, %v2049_v16, 0.0  ;;  %vm1006_vm14 = vmand %vm990_vm5, %vm998_vm6 }
 0x228   :  { %vm1010_vm3 = vmand %vm994_vm15, %vm1002_vm8  ;;  %v1030_v27 = vsel %vm1006_vm14, %v2056_v21, 0.0  ;;  %v1113_v28 = vrot.slane %v961_v26, 6  ;;  %v1175_v29 = vsel %vm3210_vm12, %v884_v23, %v1109_v24  ;;  %vm329_vm15 = vcmask 1040384  }
 0x229   :  { %v1034_v32 = vsel %vm1010_vm3, %v2056_v21, 0.0  ;;  %v1133_v33 = vrot.slane %v1030_v27, 4  ;;  %vm3251_vm13 = vmmov %vm3250_vm9 }
 0x22a   :  { %v1137_v34 = vrot.slane %v1034_v32, 4  ;;  %v1179_v35 = vsel %vm3210_vm12, %v888_v25, %v1113_v28 }
 0x22b   :  { %v1183_v17 = vsel %vm3209_vm10, %v1175_v29, %v1133_v33 }
 0x22c   :  { %v1187_v36 = vsel %vm3209_vm10, %v1179_v35, %v1137_v34  ;;  %v1191_v37 = vsel %vm3250_vm9, %v1183_v17, 0.0 }
 0x22d   :  { %v1195_v38 = vsel %vm3251_vm13, %v1187_v36, 0.0 }
 0x22e   :  { %v1745_v40 = vpack.i.bf16 %v1195_v38, %v1191_v37 }
 0x230   :  { %1746 = vrot.lane.b32.xlu1 %v1745_v40, %s1813_s3  ;;  %1751 = vrot.lane.b32.xlu0 %v1745_v40, %s1814_s25 }
 0x234   :  { %1756 = vrot.lane.b32.xlu1 %v1745_v40, %s1815_s26 }
 0x26a   :  { %v2085_v13 = vpop.permute.xlu1 %1724  ;;  %v2095_v22 = vpop.permute.xlu0 %1718 }
 0x27b   :  { %v2087_v14 = vpop.permute.xlu1 %1295  ;;  %v2099_v24 = vpop.permute.xlu0 %1291 }
 0x27f   :  { %v2089_v15 = vpop.permute.xlu1 %1731 }
 0x283   :  { %v2091_v19 = vpop.permute.xlu1 %1348 }
 0x284   :  { %3253 = vst [vmem:[#allocation3_spill] sm:$0xff] %v2091_v19 }
 0x288   :  { %v2093_v20 = vpop.permute.xlu1 %1372 }
 0x289   :  { %3254 = vst [vmem:[#allocation4_spill] sm:$0xff] %v2093_v20  ;;  %v743_v20 = vadd.s32 4294967295, %v2041_v3 }
 0x28c   :  { %v2097_v23 = vpop.permute.xlu1 %1376 }
 0x291   :  { %v2101_v25 = vpop.permute.xlu1 %1433 }
 0x296   :  { %v2105_v26 = vpop.permute.xlu1 %1490 }
 0x297   :  { %3255 = vst [vmem:[#allocation5_spill] sm:$0xff] %v2105_v26 }
 0x29b   :  { %v2109_v28 = vpop.permute.xlu1 %1543 }
 0x29c   :  { %3257 = vst [vmem:[#allocation7_spill] sm:$0xff] %v2109_v28 }
 0x2a2   :  { %v2113_v32 = vpop.permute.xlu1 %1746 }
 0x2a6   :  { %v2117_v34 = vpop.permute.xlu1 %1756 }
 0x2a7   :  { %3260 = vst [vmem:[#allocation10_spill] sm:$0xff] %v2117_v34 }
 0x2c4   :  { %v1685_v41 = vpop.f32.mrb[0].mxu1 }
 0x2c5   :  { %v1645_v42 = vmul.f32 -1.442695, %v1685_v41  ;;  %v227_v44 = vpop.f32.mrb[1].mxu1 }
 0x2c6   :  { %v1644_v46 = vmul.f32 -1.442695, %v227_v44 }
 0x2c7   :  { %1762 = vpow2.f32 %v1645_v42 }
 0x2c8   :  { %1764 = vpow2.f32 %v1644_v46  ;;  %v1688_v47 = vpop.f32.mrb[2].mxu1 }
 0x2c9   :  { %v1647_v48 = vmul.f32 -1.442695, %v1688_v47  ;;  %v237_v49 = vpop.f32.mrb[3].mxu1 }
 0x2ca   :  { %v1646_v50 = vmul.f32 -1.442695, %v237_v49 }
 0x2cb   :  { %1766 = vpow2.f32 %v1647_v48 }
 0x2cc   :  { %1768 = vpow2.f32 %v1646_v50 }
 0x2d1   :  { %v1763_v52 = vpop.eup %1762 }
 0x2d2   :  { %v1765_v53 = vpop.eup %1764  ;;  %v259_v54 = vadd.f32 1.0, %v1763_v52 }
 0x2d3   :  { %v258_v55 = vadd.f32 1.0, %v1765_v53 }
 0x2d4   :  { %1770 = vrcp.f32 %v259_v54 }
 0x2d5   :  { %v1767_v56 = vpop.eup %1766  ;;  %1772 = vrcp.f32 %v258_v55 }
 0x2d6   :  { %v1769_v57 = vpop.eup %1768  ;;  %v261_v58 = vadd.f32 1.0, %v1767_v56 }
 0x2d7   :  { %v260_v61 = vadd.f32 1.0, %v1769_v57 }
 0x2d8   :  { %1774 = vrcp.f32 %v261_v58 }
 0x2d9   :  { %1776 = vrcp.f32 %v260_v61 }
 0x2de   :  { %v1771_v62 = vpop.eup %1770 }
 0x2df   :  { %277 = vperm.xlu1 %1760, %v1771_v62   ;;  %v1773_v63 = vpop.eup %1772 }
 0x2e2   :  { %v1775_v4 = vpop.eup %1774 }
 0x2e3   :  { %272 = vperm.xlu1 %1760, %v1773_v63   ;;  %287 = vperm.xlu0 %1744, %v1775_v4   ;;  %v1777_v6 = vpop.eup %1776 }
 0x2e7   :  { %282 = vperm.xlu1 %1760, %v1777_v6   ;;  %1761 = vset.pattern.permute.xlu0 %v1812_v51  ;;  %v2103_v51 = vpop.permute.xlu0 %1352 }
 0x2eb   :  { %v2107_v27 = vpop.permute.xlu0 %1429 }
 0x2ec   :  { %3256 = vst [vmem:[#allocation6_spill] sm:$0xff] %v2107_v27 }
 0x2ef   :  { %v2111_v29 = vpop.permute.xlu0 %1486 }
 0x2f0   :  { %3258 = vst [vmem:[#allocation8_spill] sm:$0xff] %v2111_v29 }
 0x2f3   :  { %v2115_v33 = vpop.permute.xlu0 %1547 }
 0x2f4   :  { %3259 = vst [vmem:[#allocation9_spill] sm:$0xff] %v2115_v33 }
 0x2f7   :  { %v2119_v35 = vpop.permute.xlu0 %1238 }
 0x2fb   :  { %v2121_v36 = vpop.permute.xlu0 %1751 }
 0x2fc   :  { %3261 = vst [vmem:[#allocation11_spill] sm:$0xff] %v2121_v36 }
 0x35e   :  { %v278_v17 = vpop.permute.xlu1 %277 }
 0x35f   :  { %v2124_v38 = vmul.f32 %v278_v17, %v1854_v2  ;;  %v2127_v40 = vmul.f32 %v278_v17, %v1863_v5 }
 0x361   :  { %3262 = vst [vmem:[#allocation12_spill] sm:$0xff] %v2124_v38  ;;  %3263 = vst [vmem:[#allocation13_spill] sm:$0xff] %v2127_v40 }
 0x362   :  { %v273_v37 = vpop.permute.xlu1 %272  ;;  %v288_v5 = vpop.permute.xlu0 %287 }
 0x363   :  { %v2130_v41 = vmul.f32 %v273_v37, %v1844_v0  ;;  %v2133_v42 = vmul.f32 %v273_v37, %v1849_v1  ;;  %v2147_v53 = vmul.f32 %v288_v5, %v1877_v9  ;;  %v2153_v61 = vmul.f32 %v288_v5, %v1872_v8 }
 0x365   :  { %3264 = vst [vmem:[#allocation14_spill] sm:$0xff] %v2130_v41  ;;  %3265 = vst [vmem:[#allocation15_spill] sm:$0xff] %v2133_v42  ;;  %v298_v44 = vadd.f32 %v2124_v38, %v2130_v41  ;;  %v305_v46 = vadd.f32 %v2127_v40, %v2133_v42  ;;  %v315_v47 = vmax.f32 %v2130_v41, %v2124_v38 }
 0x366   :  { %v322_v2 = vmax.f32 %v2133_v42, %v2127_v40  ;;  %v283_v48 = vpop.permute.xlu1 %282  ;;  %3267 = vst [vmem:[#allocation17_spill] sm:$0xff] %v2147_v53  ;;  %3269 = vst [vmem:[#allocation19_spill] sm:$0xff] %v2153_v61  ;;  %v2317_v42 = vadd.s32 3, %v1934_v59 }
 0x367   :  { %v299_v49 = vrot.slane %v298_v44, 4  ;;  %v306_v0 = vrot.slane %v305_v46, 4  ;;  %v316_v50 = vrot.slane %v315_v47, 4  ;;  %v2144_v1 = vmul.f32 %v283_v48, %v1887_v11 }
 0x368   :  { %v323_v52 = vrot.slane %v322_v2, 4  ;;  %v2150_v58 = vmul.f32 %v283_v48, %v1882_v10 }
 0x369   :  { %3266 = vst [vmem:[#allocation16_spill] sm:$0xff] %v2144_v1  ;;  %v300_v54 = vadd.f32 %v299_v49, %v298_v44  ;;  %v307_v55 = vadd.f32 %v306_v0, %v305_v46  ;;  %v317_v56 = vmax.f32 %v315_v47, %v316_v50  ;;  %v339_v11 = vadd.f32 %v2147_v53, %v2144_v1 }
 0x36a   :  { %v324_v57 = vmax.f32 %v322_v2, %v323_v52  ;;  %3268 = vst [vmem:[#allocation18_spill] sm:$0xff] %v2150_v58  ;;  %v332_v46 = vadd.f32 %v2153_v61, %v2150_v58  ;;  %v355_v50 = vmax.f32 %v2144_v1, %v2147_v53 }
 0x36b   :  { %v301_v62 = vrot.slane %v300_v54, 2  ;;  %v308_v63 = vrot.slane %v307_v55, 2  ;;  %v318_v4 = vrot.slane %v317_v56, 2  ;;  %v340_v49 = vrot.slane %v339_v11, 4 }
 0x36c   :  { %v325_v6 = vrot.slane %v324_v57, 2  ;;  %v333_v0 = vrot.slane %v332_v46, 4 }
 0x36d   :  { %v302_v17 = vadd.f32 %v301_v62, %v300_v54  ;;  %v309_v9 = vadd.f32 %v308_v63, %v307_v55  ;;  %v319_v37 = vmax.f32 %v317_v56, %v318_v4  ;;  %v341_v62 = vadd.f32 %v340_v49, %v339_v11 }
 0x36e   :  { %v326_v44 = vmax.f32 %v324_v57, %v325_v6  ;;  %v348_v57 = vmax.f32 %v2150_v58, %v2153_v61  ;;  %v334_v6 = vadd.f32 %v333_v0, %v332_v46 }
 0x36f   :  { %v303_v47 = vrot.slane %v302_v17, 1  ;;  %v310_v10 = vrot.slane %v309_v9, 1  ;;  %v320_v2 = vrot.slane %v319_v37, 1 }
 0x370   :  { %v327_v48 = vrot.slane %v326_v44, 1 }
 0x371   :  { %v304_v8 = vadd.f32 %v303_v47, %v302_v17  ;;  %v311_v5 = vadd.f32 %v310_v10, %v309_v9  ;;  %v321_v55 = vmax.f32 %v319_v37, %v320_v2  ;;  %v356_v17 = vrot.slane %v355_v50, 4 }
 0x372   :  { %v328_v56 = vmax.f32 %v326_v44, %v327_v48  ;;  %v349_v9 = vrot.slane %v348_v57, 4  ;;  %v342_v37 = vrot.slane %v341_v62, 2  ;;  %v335_v44 = vrot.slane %v334_v6, 2 }
 0x373   :  { %v313_v52 = vmul.f32 0.0625, %v304_v8  ;;  %v314_v54 = vmul.f32 0.0625, %v311_v5  ;;  %v357_v11 = vmax.f32 %v355_v50, %v356_v17 }
 0x374   :  { %v350_v47 = vmax.f32 %v348_v57, %v349_v9  ;;  %v343_v10 = vadd.f32 %v342_v37, %v341_v62  ;;  %v336_v46 = vadd.f32 %v335_v44, %v334_v6  ;;  %v366_v37 = vadd.s32 128, %v1930_v45 }
 0x375   :  { %v2164_v63 = vsel %vm329_vm15, %v314_v54, %v328_v56  ;;  %v2167_v4 = vsel %vm329_vm15, %v313_v52, %v321_v55  ;;  %v358_v2 = vrot.slane %v357_v11, 2  ;;  %v367_v44 = vadd.s32 256, %v1930_v45 }
 0x376   :  { %577 = vrot.lane.b32.xlu0 %v2164_v63, %s1797_s8  ;;  %575 = vrot.lane.b32.xlu1 %v2167_v4, %s1797_s8  ;;  %v351_v48 = vrot.slane %v350_v47, 2  ;;  %v344_v8 = vrot.slane %v343_v10, 1  ;;  %v337_v5 = vrot.slane %v336_v46, 1 }
 0x377   :  { %v359_v49 = vmax.f32 %v357_v11, %v358_v2  ;;  %v384_v11 = vand.u32 511, %v366_v37 }
 0x378   :  { %v352_v0 = vmax.f32 %v350_v47, %v351_v48  ;;  %v345_v50 = vadd.f32 %v344_v8, %v343_v10  ;;  %v338_v52 = vadd.f32 %v337_v5, %v336_v46  ;;  %v391_v47 = vand.u32 511, %v367_v44 }
 0x379   :  { %v360_v54 = vrot.slane %v359_v49, 1  ;;  %v370_v10 = vadd.s32 640, %v1930_v45  ;;  %v371_v46 = vadd.s32 768, %v1930_v45  ;;  %v1649_v2 = vadd.s32 4294967168, %v384_v11 }
 0x37a   :  { %648 = vrot.lane.b32.xlu0 %v2167_v4, %s1801_s9  ;;  %650 = vrot.lane.b32.xlu1 %v2164_v63, %s1801_s9  ;;  %v353_v55 = vrot.slane %v352_v0, 1  ;;  %v347_v56 = vmul.f32 0.0625, %v345_v50  ;;  %v346_v57 = vmul.f32 0.0625, %v338_v52  ;;  %v1650_v48 = vadd.s32 4294967168, %v391_v47 }
 0x37b   :  { %v361_v62 = vmax.f32 %v359_v49, %v360_v54  ;;  %v412_v8 = vand.u32 511, %v370_v10  ;;  %v419_v5 = vand.u32 511, %v371_v46  ;;  %v488_v49 = vand.u32 15, %v1649_v2 }
 0x37c   :  { %v354_v6 = vmax.f32 %v352_v0, %v353_v55  ;;  %v495_v0 = vand.u32 15, %v1650_v48 }
 0x37d   :  { %v2194_v17 = vsel %vm329_vm15, %v347_v56, %v361_v62  ;;  %v1653_v50 = vadd.s32 4294967168, %v412_v8  ;;  %v1654_v52 = vadd.s32 4294967168, %v419_v5  ;;  %vm534_vm0 = vcmp.ne.s32.totalorder %v488_v49, 0 }
 0x37e   :  { %723 = vrot.lane.b32.xlu0 %v2164_v63, %s1802_s10  ;;  %721 = vrot.lane.b32.xlu1 %v2167_v4, %s1802_s10  ;;  %v2199_v9 = vsel %vm329_vm15, %v346_v57, %v354_v6  ;;  %vm542_vm1 = vcmp.lt.s32.totalorder %v488_v49, 0  ;;  %vm535_vm2 = vcmp.ne.s32.totalorder %v495_v0, 0  ;;  %vm543_vm4 = vcmp.lt.s32.totalorder %v495_v0, 0 }
 0x37f   :  { %v558_v54 = vadd.s32 16, %v488_v49  ;;  %v516_v55 = vand.u32 15, %v1653_v50  ;;  %vm550_vm5 = vmand %vm542_vm1, %vm534_vm0  ;;  %v559_v56 = vadd.s32 16, %v495_v0  ;;  %v523_v57 = vand.u32 15, %v1654_v52 }
 0x380   :  { %vm551_vm6 = vmand %vm543_vm4, %vm535_vm2 }
 0x381   :  { %v2227_v62 = vsel %vm550_vm5, %v558_v54, %v488_v49  ;;  %vm538_vm7 = vcmp.ne.s32.totalorder %v516_v55, 0  ;;  %vm546_vm8 = vcmp.lt.s32.totalorder %v516_v55, 0  ;;  %v567_v6 = vsel %vm551_vm6, %v559_v56, %v495_v0 }
 0x382   :  { %818 = vrot.lane.b32.xlu0 %v2167_v4, %s1800_s1  ;;  %820 = vrot.lane.b32.xlu1 %v2164_v63, %s1800_s1  ;;  %vm539_vm11 = vcmp.ne.s32.totalorder %v523_v57, 0  ;;  %vm547_vm14 = vcmp.lt.s32.totalorder %v523_v57, 0  ;;  %vm792_vm3 = vcmp.ge.s32.totalorder %v2227_v62, 0  ;;  %vm796_vm9 = vcmp.lt.s32.totalorder %v2227_v62, 16  ;;  %vm554_vm13 = vmand %vm546_vm8, %vm538_vm7 }
 0x383   :  { %v562_v37 = vadd.s32 16, %v516_v55  ;;  %v563_v44 = vadd.s32 16, %v523_v57  ;;  %v2232_v11 = vadd.s32 4294967293, %v2227_v62  ;;  %vm793_vm15 = vcmp.ge.s32.totalorder %v567_v6, 0  ;;  %vm555_vm1 = vmand %vm547_vm14, %vm539_vm11 }
 0x384   :  { %vm797_vm0 = vcmp.lt.s32.totalorder %v567_v6, 16  ;;  %v2234_v47 = vadd.s32 4294967293, %v567_v6  ;;  %v664_v10 = vadd.s32 4294967294, %v2227_v62  ;;  %vm2237_vm2 = vmand %vm792_vm3, %vm796_vm9  ;;  %v665_v2 = vadd.s32 4294967294, %v567_v6 }
 0x385   :  { %v737_v48 = vadd.s32 4294967295, %v2227_v62  ;;  %vm2242_vm4 = vmand %vm793_vm15, %vm797_vm0  ;;  %v2246_v5 = vsel %vm554_vm13, %v562_v37, %v516_v55  ;;  %v2248_v49 = vsel %vm555_vm1, %v563_v44, %v523_v57  ;;  %vm599_vm6 = vcmp.ge.s32.totalorder %v2232_v11, 0 }
 0x386   :  { %893 = vrot.lane.b32.xlu0 %v2164_v63, %s1803_s11  ;;  %891 = vrot.lane.b32.xlu1 %v2167_v4, %s1803_s11  ;;  %vm607_vm7 = vcmp.lt.s32.totalorder %v2232_v11, 16  ;;  %v738_v0 = vadd.s32 4294967295, %v567_v6  ;;  %vm672_vm14 = vcmp.ge.s32.totalorder %v664_v10, 0  ;;  %vm680_vm3 = vcmp.lt.s32.totalorder %v664_v10, 16 }
 0x387   :  { %v812_v52 = vsel %vm2237_vm2, %v2167_v4, 0.0  ;;  %vm3219_vm9 = vcmp.lt.s32.totalorder %v1930_v45, 2  ;;  %v2262_v55 = vadd.s32 4294967294, %v2039_v39  ;;  %vm3220_vm13 = vcmp.lt.s32.totalorder %v1930_v45, 1  ;;  %vm2274_vm5 = vmand %vm672_vm14, %vm680_vm3 }
 0x388   :  { %v813_v56 = vsel %vm2242_vm4, %v2164_v63, 0.0  ;;  %vm798_vm0 = vcmp.lt.s32.totalorder %v2246_v5, 16  ;;  %vm673_vm1 = vcmp.ge.s32.totalorder %v665_v2, 0  ;;  %vm681_vm10 = vcmp.lt.s32.totalorder %v665_v2, 16 }
 0x389   :  { %vm745_vm12 = vcmp.ge.s32.totalorder %v737_v48, 0  ;;  %vm753_vm2 = vcmp.lt.s32.totalorder %v737_v48, 16  ;;  %vm799_vm11 = vcmp.lt.s32.totalorder %v2248_v49, 16  ;;  %v2278_v57 = vrot.slane %v812_v52, 2  ;;  %vm2297_vm14 = vmand %vm673_vm1, %vm681_vm10 }
 0x38a   :  { %964 = vrot.lane.b32.xlu0 %v2167_v4, %s1804_s12  ;;  %966 = vrot.lane.b32.xlu1 %v2164_v63, %s1804_s12  ;;  %vm746_vm4 = vcmp.ge.s32.totalorder %v738_v0, 0  ;;  %v2281_v63 = vadd.s32 1, %v1934_v59  ;;  %v2284_v37 = vadd.s32 2, %v1934_v59  ;;  %vm754_vm15 = vcmp.lt.s32.totalorder %v738_v0, 16  ;;  %vm2324_vm10 = vmand %vm745_vm12, %vm753_vm2 }
 0x38b   :  { %v2286_v46 = vrot.slane %v813_v56, 2  ;;  %v2289_v8 = vadd.s32 2, %v2227_v62  ;;  %v2291_v10 = vadd.s32 2, %v567_v6  ;;  %v2304_v61 = vadd.s32 1, %v567_v6  ;;  %vm2336_vm8 = vmand %vm746_vm4, %vm754_vm15 }
 0x38c   :  { %v2307_v56 = vadd.s32 1, %v2227_v62  ;;  %v2309_v58 = vadd.s32 3, %v567_v6  ;;  %v2320_v38 = vadd.s32 3, %v2227_v62  ;;  %vm849_vm1 = vcmp.lt.s32.totalorder %v2281_v63, 16 }
 0x38d   :  { %vm922_vm12 = vcmp.lt.s32.totalorder %v2284_v37, 16  ;;  %vm3284_vm15 = vcmp.lt.s32.totalorder %v1930_v45, 3  ;;  %vm987_vm4 = vcmp.ge.s32.totalorder %v2317_v42, 0  ;;  %vm3285_vm3 = vcmp.lt.s32.totalorder %v2234_v47, 16 }
 0x38e   :  { %581 = vrot.lane.b32.xlu0 %v2194_v17, %s1797_s8  ;;  %579 = vrot.lane.b32.xlu1 %v2199_v9, %s1797_s8  ;;  %v2394_v41 = vadd.s32 4294967293, %v2246_v5  ;;  %vm3311_vm2 = vcmp.lt.s32.totalorder %v2291_v10, 16 }
 0x392   :  { %652 = vrot.lane.b32.xlu0 %v2199_v9, %s1801_s9  ;;  %654 = vrot.lane.b32.xlu1 %v2194_v17, %s1801_s9 }
 0x396   :  { %727 = vrot.lane.b32.xlu0 %v2194_v17, %s1802_s10  ;;  %725 = vrot.lane.b32.xlu1 %v2199_v9, %s1802_s10 }
 0x39a   :  { %822 = vrot.lane.b32.xlu0 %v2199_v9, %s1800_s1  ;;  %824 = vrot.lane.b32.xlu1 %v2194_v17, %s1800_s1 }
 0x39e   :  { %897 = vrot.lane.b32.xlu0 %v2194_v17, %s1803_s11  ;;  %895 = vrot.lane.b32.xlu1 %v2199_v9, %s1803_s11 }
 0x3a2   :  { %968 = vrot.lane.b32.xlu0 %v2199_v9, %s1804_s12  ;;  %970 = vrot.lane.b32.xlu1 %v2194_v17, %s1804_s12 }
 0x3e8   :  { %v2255_v50 = vpop.permute.xlu0 %577  ;;  %v576_v54 = vpop.permute.xlu1 %575 }
 0x3e9   :  { %v589_v6 = vsel %vm3284_vm15, %v1944_v7, %v576_v54 }
 0x3ec   :  { %v649_v44 = vpop.permute.xlu0 %648  ;;  %v2293_v53 = vpop.permute.xlu1 %650 }
 0x3ed   :  { %v662_v1 = vsel %vm3219_vm9, %v1962_v18, %v649_v44  ;;  %v661_v40 = vsel %vm3219_vm9, %v649_v44, %v2293_v53  ;;  %vm2349_vm9 = vmand %vm599_vm6, %vm607_vm7  ;;  %vm3298_vm6 = vcmask 1045504  }
 0x3ee   :  { %v712_v2 = vsel %vm2274_vm5, %v662_v1, 0.0  ;;  %v713_v59 = vsel %vm2297_vm14, %v661_v40, 0.0  ;;  %vm3286_vm14 = vcmp.ge.s32.totalorder %v2234_v47, 0  ;;  %v639_v47 = vsel %vm2349_vm9, %v589_v6, 0.0 }
 0x3ef   :  { %v1044_v48 = vrot.slane %v712_v2, 6  ;;  %vm2374_vm5 = vmand %vm3286_vm14, %vm3285_vm3  ;;  %v1045_v2 = vrot.slane %v713_v59, 6  ;;  %vm3293_vm9 = vcmask 1041408   ;;  %vm995_vm14 = vcmp.lt.s32.totalorder %v2317_v42, 16 }
 0x3f0   :  { %v2340_v62 = vpop.permute.xlu0 %723  ;;  %v722_v0 = vpop.permute.xlu1 %721  ;;  %v2407_v40 = vadd.s32 4294967293, %v2248_v49  ;;  %v2410_v6 = vadd.s32 4294967294, %v2041_v3  ;;  %vm3294_vm3 = vcmp.ge.s32.totalorder %v2248_v49, 0 }
 0x3f1   :  { %v735_v11 = vsel %vm3220_vm13, %v1994_v30, %v722_v0  ;;  %v734_v4 = vsel %vm3220_vm13, %v722_v0, %v2340_v62  ;;  %vm3289_vm13 = vmmov %vm3284_vm15  ;;  %v1148_v1 = vsel %vm3293_vm9, %v639_v47, %v1044_v48  ;;  %vm3310_vm15 = vcmp.lt.s32.totalorder %v1930_v45, 126 }
 0x3f2   :  { %v588_v52 = vsel %vm3289_vm13, %v576_v54, %v2255_v50  ;;  %v785_v0 = vsel %vm2324_vm10, %v735_v11, 0.0  ;;  %v786_v33 = vsel %vm2336_vm8, %v734_v4, 0.0  ;;  %vm3290_vm8 = vcmp.ge.s32.totalorder %v2246_v5, 0  ;;  %vm2416_vm13 = vmand %vm3294_vm3, %vm799_vm11 }
 0x3f3   :  { %v1068_v28 = vrot.slane %v785_v0, 4  ;;  %v1069_v26 = vrot.slane %v786_v33, 4  ;;  %vm2400_vm10 = vmand %vm3290_vm8, %vm798_vm0  ;;  %v640_v48 = vsel %vm2374_vm5, %v588_v52, 0.0  ;;  %vm3297_vm0 = vcmask 1043456  }
 0x3f4   :  { %v2391_v54 = vpop.permute.xlu0 %818  ;;  %v821_v33 = vpop.permute.xlu1 %820  ;;  %v2425_v0 = vadd.s32 4294967293, %v2041_v3  ;;  %v1149_v47 = vsel %vm3293_vm9, %v640_v48, %v1045_v2  ;;  %vm3299_vm11 = vcmp.ge.s32.totalorder %v2281_v63, 0  ;;  %vm3302_vm5 = vmmov %vm3297_vm0  ;;  %vm3312_vm8 = vcmp.ge.s32.totalorder %v2291_v10, 0 }
 0x3f5   :  { %v1156_v4 = vsel %vm3297_vm0, %v1148_v1, %v1068_v28  ;;  %vm2436_vm3 = vmand %vm3299_vm11, %vm849_vm1  ;;  %v2441_v28 = vadd.s32 4294967294, %v2246_v5  ;;  %v1157_v2 = vsel %vm3302_vm5, %v1149_v47, %v1069_v26  ;;  %vm3306_vm11 = vcmp.lt.s32.totalorder %v2289_v8, 16 }
 0x3f6   :  { %v2430_v34 = vsel %vm3298_vm6, %v1156_v4, %v2278_v57  ;;  %vm3303_vm6 = vcmp.ge.s32.totalorder %v2284_v37, 0  ;;  %vm3307_vm5 = vcmp.ge.s32.totalorder %v2289_v8, 0  ;;  %v669_v26 = vadd.s32 4294967294, %v2248_v49 }
 0x3f7   :  { %1202 = vrot.lane.b32.xlu0 %v2430_v34, %s1806_s2  ;;  %vm2453_vm1 = vmand %vm3303_vm6, %vm922_vm12  ;;  %vm612_vm6 = vcmp.lt.s32.totalorder %v2407_v40, 16  ;;  %vm3337_vm12 = vcmp.lt.s32.totalorder %v2307_v56, 16  ;;  %v593_v11 = vadd.s32 4294967293, %v2039_v39 }
 0x3f8   :  { %v894_v63 = vpop.permute.xlu0 %893  ;;  %v892_v1 = vpop.permute.xlu1 %891  ;;  %vm2466_vm7 = vmand %vm3307_vm5, %vm3306_vm11 }
 0x3f9   :  { %v905_v48 = vsel %vm3310_vm15, %v2049_v16, %v892_v1  ;;  %vm2481_vm11 = vmand %vm3312_vm8, %vm3311_vm2 }
 0x3fa   :  { %vm3315_vm5 = vmmov %vm3310_vm15  ;;  %vm3317_vm15 = vcmask 1045504   ;;  %v954_v52 = vsel %vm2453_vm1, %v905_v48, 0.0  ;;  %vm3321_vm1 = vcmp.lt.s32.totalorder %v2320_v38, 16 }
 0x3fb   :  { %v903_v4 = vsel %vm3315_vm5, %v894_v63, %v2049_v16  ;;  %vm3316_vm0 = vmmov %vm3315_vm5  ;;  %v2495_v10 = vsel %vm3317_vm15, %v1157_v2, %v2286_v46  ;;  %v1106_v2 = vrot.slane %v954_v52, 6  ;;  %vm3325_vm15 = vcmp.lt.s32.totalorder %v2309_v58, 16 }
 0x3fc   :  { %v904_v47 = vsel %vm3316_vm0, %v892_v1, %v894_v63  ;;  %vm2503_vm2 = vmand %vm987_vm4, %vm995_vm14  ;;  %v2509_v63 = vadd.s32 4294967295, %v2246_v5  ;;  %vm3320_vm0 = vcmp.lt.s32.totalorder %v1930_v45, 127  ;;  %1206 = vrot.lane.b32.xlu0 %v2495_v10, %s1806_s2  ;;  %vm3322_vm4 = vcmp.ge.s32.totalorder %v2320_v38, 0  ;;  %v965_v57 = vpop.permute.xlu0 %964  ;;  %v967_v27 = vpop.permute.xlu1 %966 }
 0x3fd   :  { %v832_v46 = vsel %vm3320_vm0, %v2037_v43, %v2391_v54  ;;  %vm2521_vm14 = vmand %vm3322_vm4, %vm3321_vm1  ;;  %v742_v1 = vadd.s32 4294967295, %v2248_v49  ;;  %v955_v48 = vsel %vm2466_vm7, %v904_v47, 0.0  ;;  %v956_v52 = vsel %vm2481_vm11, %v903_v4, 0.0 }
 0x3fe   :  { %vm3326_vm0 = vcmp.ge.s32.totalorder %v2309_v58, 0  ;;  %vm3329_vm1 = vcmp.lt.s32.totalorder %v1930_v45, 125  ;;  %vm3330_vm7 = vcmp.lt.s32.totalorder %v2304_v61, 16  ;;  %vm3331_vm4 = vcmp.ge.s32.totalorder %v2304_v61, 0 }
 0x3ff   :  { %vm2535_vm9 = vmand %vm3326_vm0, %vm3325_vm15  ;;  %v978_v36 = vsel %vm3329_vm1, %v2056_v21, %v965_v57  ;;  %vm3334_vm15 = vcmp.lt.s32.totalorder %v1930_v45, 127  ;;  %v881_v19 = vsel %vm2436_vm3, %v832_v46, 0.0  ;;  %vm3346_vm3 = vcmp.ge.s32.totalorder %v2407_v40, 0 }
 0x400   :  { %vm2547_vm11 = vmand %vm3331_vm4, %vm3330_vm7  ;;  %v830_v58 = vsel %vm3334_vm15, %v821_v33, %v2037_v43  ;;  %v1027_v3 = vsel %vm2503_vm2, %v978_v36, 0.0  ;;  %vm3338_vm7 = vcmp.ge.s32.totalorder %v2307_v56, 0  ;;  %v831_v47 = vsel %vm3334_vm15, %v2391_v54, %v821_v33  ;;  %v582_v54 = vpop.permute.xlu0 %581  ;;  %v580_v46 = vpop.permute.xlu1 %579 }
 0x401   :  { %vm3335_vm0 = vmmov %vm3329_vm1  ;;  %v1130_v29 = vrot.slane %v1027_v3, 4  ;;  %v1107_v36 = vrot.slane %v955_v48, 6  ;;  %vm3342_vm2 = vcmp.ge.s32.totalorder %v2394_v41, 0  ;;  %vm685_vm15 = vcmp.lt.s32.totalorder %v669_v26, 16 }
 0x402   :  { %v976_v8 = vsel %vm3335_vm0, %v967_v27, %v2056_v21  ;;  %vm3336_vm1 = vmmov %vm3335_vm0 }
 0x403   :  { %v977_v4 = vsel %vm3336_vm1, %v965_v57, %v967_v27  ;;  %vm2565_vm4 = vmand %vm3338_vm7, %vm3337_vm12  ;;  %v1108_v57 = vrot.slane %v956_v52, 6  ;;  %v1029_v56 = vsel %vm2535_vm9, %v976_v8, 0.0  ;;  %vm3341_vm12 = vcmp.lt.s32.totalorder %v2394_v41, 16 }
 0x404   :  { %v1028_v27 = vsel %vm2521_vm14, %v977_v4, 0.0  ;;  %vm2582_vm0 = vmand %vm3342_vm2, %vm3341_vm12  ;;  %vm3345_vm1 = vcmask 1041408   ;;  %vm3349_vm9 = vcmask 1043456   ;;  %vm3350_vm12 = vcmp.lt.s32.totalorder %v2410_v6, 16 }
 0x405   :  { %v1172_v33 = vsel %vm3345_vm1, %v881_v19, %v1106_v2  ;;  %v1131_v44 = vrot.slane %v1028_v27, 4  ;;  %vm2591_vm14 = vmand %vm3346_vm3, %vm612_vm6  ;;  %vm3351_vm2 = vcmp.ge.s32.totalorder %v2410_v6, 0  ;;  %v883_v41 = vsel %vm2547_vm11, %v830_v58, 0.0 }
 0x406   :  { %v1180_v48 = vsel %vm3349_vm9, %v1172_v33, %v1130_v29  ;;  %vm2600_vm8 = vmand %vm3351_vm2, %vm3350_vm12  ;;  %v882_v40 = vsel %vm2565_vm4, %v831_v47, 0.0  ;;  %v1132_v2 = vrot.slane %v1029_v56, 4  ;;  %vm3354_vm9 = vcmp.lt.s32.totalorder %v2441_v28, 16 }
 0x407   :  { %vm3355_vm12 = vcmp.ge.s32.totalorder %v2441_v28, 0  ;;  %vm3358_vm7 = vmmov %vm3345_vm1  ;;  %vm3360_vm11 = vcmp.lt.s32.totalorder %v1930_v45, 3  ;;  %vm3361_vm3 = vcmask 1045504   ;;  %vm3362_vm4 = vcmp.ge.s32.totalorder %v669_v26, 0  ;;  %v653_v28 = vpop.permute.xlu0 %652  ;;  %v655_v26 = vpop.permute.xlu1 %654 }
 0x408   :  { %vm2614_vm2 = vmand %vm3355_vm12, %vm3354_vm9  ;;  %v1173_v52 = vsel %vm3358_vm7, %v882_v40, %v1107_v36  ;;  %v584_v37 = vsel %vm3360_vm11, %v582_v54, %v1944_v7  ;;  %v1188_v58 = vsel %vm3361_vm3, %v1180_v48, 0.0  ;;  %vm3365_vm9 = vcmask 1043456  }
 0x409   :  { %vm3359_vm6 = vmmov %vm3345_vm1  ;;  %v1181_v4 = vsel %vm3365_vm9, %v1173_v52, %v1131_v44  ;;  %vm3368_vm12 = vcmp.ge.s32.totalorder %v2425_v0, 0  ;;  %1259 = vrot.lane.b32.xlu0 %v1188_v58, %s1805_s21  ;;  %1200 = vrot.lane.b32.xlu1 %v1188_v58, %s1806_s2  ;;  %vm759_vm3 = vcmp.lt.s32.totalorder %v743_v20, 16  ;;  %v910_v19 = vadd.s32 2, %v1936_v60 }
 0x40a   :  { %v1174_v38 = vsel %vm3359_vm6, %v883_v41, %v1108_v57  ;;  %vm2626_vm5 = vmand %vm3362_vm4, %vm685_vm15  ;;  %vm3367_vm6 = vcmp.lt.s32.totalorder %v2425_v0, 16  ;;  %vm3371_vm15 = vcmp.lt.s32.totalorder %v1930_v45, 2  ;;  %v3396_v57 = vsel %vm2416_vm13, %v2194_v17, 0.0 }
 0x40b   :  { %vm3366_vm7 = vmmov %vm3360_vm11  ;;  %v659_v47 = vsel %vm3371_vm15, %v1962_v18, %v653_v28  ;;  %v726_v12 = vpop.permute.xlu1 %725 }
 0x40c   :  { %v586_v3 = vsel %vm3366_vm7, %v1944_v7, %v580_v46  ;;  %vm2638_vm11 = vmand %vm3368_vm12, %vm3367_vm6  ;;  %v716_v36 = vsel %vm2614_vm2, %v659_v47, 0.0  ;;  %vm3375_vm6 = vcmp.lt.s32.totalorder %v2509_v63, 16  ;;  %vm3376_vm12 = vcmp.ge.s32.totalorder %v2509_v63, 0 }
 0x40d   :  { %vm3372_vm4 = vmmov %vm3366_vm7  ;;  %v1048_v44 = vrot.slane %v716_v36, 6  ;;  %v643_v48 = vsel %vm2582_vm0, %v586_v3, 0.0  ;;  %v645_v6 = vsel %vm2638_vm11, %v584_v37, 0.0  ;;  %vm3389_vm0 = vcmp.lt.s32.totalorder %v1930_v45, 1 }
 0x40e   :  { %v585_v27 = vsel %vm3372_vm4, %v580_v46, %v582_v54  ;;  %vm3373_vm9 = vmmov %vm3371_vm15  ;;  %vm3379_vm15 = vcmask 1043456   ;;  %vm3380_vm4 = vcmp.lt.s32.totalorder %v742_v1, 16 }
 0x40f   :  { %v657_v0 = vsel %vm3373_vm9, %v655_v26, %v1962_v18  ;;  %vm3374_vm7 = vmmov %vm3373_vm9  ;;  %v1182_v56 = vsel %vm3379_vm15, %v1174_v38, %v1132_v2  ;;  %vm3381_vm9 = vcmp.ge.s32.totalorder %v742_v1, 0  ;;  %v728_v2 = vpop.permute.xlu0 %727  ;;  %v644_v1 = vsel %vm2591_vm14, %v585_v27, 0.0 }
 0x410   :  { %v658_v29 = vsel %vm3374_vm7, %v653_v28, %v655_v26  ;;  %vm2660_vm1 = vmand %vm3376_vm12, %vm3375_vm6  ;;  %v718_v54 = vsel %vm2600_vm8, %v657_v0, 0.0  ;;  %vm3384_vm7 = vcmask 1045504   ;;  %vm3385_vm8 = vcmp.ge.s32.totalorder %v743_v20, 0 }
 0x411   :  { %v717_v33 = vsel %vm2626_vm5, %v658_v29, 0.0  ;;  %vm2671_vm2 = vmand %vm3381_vm9, %vm3380_vm4  ;;  %v2676_v63 = vsel %vm3384_vm7, %v1181_v4, 0.0  ;;  %v1050_v41 = vrot.slane %v718_v54, 6  ;;  %vm3388_vm5 = vcmask 1041408  }
 0x412   :  { %v1049_v40 = vrot.slane %v717_v33, 6  ;;  %vm2682_vm6 = vmand %vm3385_vm8, %vm759_vm3  ;;  %v1152_v52 = vsel %vm3388_vm5, %v643_v48, %v1048_v44  ;;  %1263 = vrot.lane.b32.xlu0 %v2676_v63, %s1805_s21  ;;  %1204 = vrot.lane.b32.xlu1 %v2676_v63, %s1806_s2  ;;  %v730_v20 = vsel %vm3389_vm0, %v728_v2, %v1994_v30  ;;  %v739_v28 = vadd.s32 4294967295, %v2039_v39 }
 0x413   :  { %vm3390_vm3 = vmmov %vm3388_vm5  ;;  %v791_v61 = vsel %vm2682_vm6, %v730_v20, 0.0  ;;  %v3395_v29 = vsel %vm2400_vm10, %v2199_v9, 0.0  ;;  %v1092_v54 = vrot.slane %v3396_v57, 2  ;;  %vm674_vm9 = vcmp.ge.s32.totalorder %v2262_v55, 0 }
 0x414   :  { %v1154_v38 = vsel %vm3390_vm3, %v645_v6, %v1050_v41  ;;  %vm3391_vm12 = vmmov %vm3390_vm3  ;;  %v1074_v0 = vrot.slane %v791_v61, 4  ;;  %v1091_v36 = vrot.slane %v3395_v29, 2  ;;  %vm682_vm10 = vcmp.lt.s32.totalorder %v2262_v55, 16 }
 0x415   :  { %v1153_v42 = vsel %vm3391_vm12, %v644_v1, %v1049_v40  ;;  %vm3392_vm14 = vmmov %vm3389_vm0  ;;  %vm747_vm13 = vcmp.ge.s32.totalorder %v739_v28, 0  ;;  %vm755_vm8 = vcmp.lt.s32.totalorder %v739_v28, 16  ;;  %v911_v6 = vadd.s32 2, %v2246_v5 }
 0x416   :  { %v732_v37 = vsel %vm3392_vm14, %v1994_v30, %v726_v12  ;;  %vm3393_vm11 = vmmov %vm3389_vm0  ;;  %vm3402_vm0 = vcmp.lt.s32.totalorder %v1930_v45, 2  ;;  %vm601_vm14 = vcmp.ge.s32.totalorder %v593_v11, 0  ;;  %v837_v20 = vadd.s32 1, %v1936_v60 }
 0x417   :  { %v731_v8 = vsel %vm3393_vm11, %v726_v12, %v728_v2  ;;  %v789_v4 = vsel %vm2660_vm1, %v732_v37, 0.0  ;;  %vm3394_vm15 = vmmov %vm3384_vm7  ;;  %vm3397_vm1 = vcmask 1043456   ;;  %v660_v55 = vsel %vm3402_vm0, %v2293_v53, %v1962_v18 }
 0x418   :  { %v790_v3 = vsel %vm2671_vm2, %v731_v8, 0.0  ;;  %v2713_v26 = vsel %vm3394_vm15, %v1182_v56, 0.0  ;;  %v1072_v47 = vrot.slane %v789_v4, 4  ;;  %vm3398_vm4 = vmmov %vm3397_vm1  ;;  %v983_v2 = vadd.s32 3, %v1936_v60 }
 0x419   :  { %v1073_v27 = vrot.slane %v790_v3, 4  ;;  %1267 = vrot.lane.b32.xlu0 %v2713_v26, %s1805_s21  ;;  %1208 = vrot.lane.b32.xlu1 %v2713_v26, %s1806_s2  ;;  %vm3399_vm2 = vmmov %vm3384_vm7  ;;  %v912_v37 = vadd.s32 2, %v2248_v49  ;;  %vm919_vm0 = vcmp.ge.s32.totalorder %v911_v6, 0  ;;  %v985_v28 = vadd.s32 3, %v2248_v49 }
 0x41a   :  { %v1160_v56 = vsel %vm3397_vm1, %v1152_v52, %v1072_v47  ;;  %vm3400_vm7 = vmmov %vm3399_vm2  ;;  %v984_v52 = vadd.s32 3, %v2246_v5  ;;  %v838_v3 = vadd.s32 1, %v2246_v5 }
 0x41b   :  { %v1161_v33 = vsel %vm3398_vm4, %v1153_v42, %v1073_v27  ;;  %v2732_v9 = vsel %vm3399_vm2, %v1160_v56, %v1091_v36  ;;  %vm3401_vm6 = vmmov %vm3397_vm1  ;;  %vm3404_vm1 = vcmp.lt.s32.totalorder %v1930_v45, 3  ;;  %vm3405_vm4 = vcmask 1041408  }
 0x41c   :  { %v2735_v17 = vsel %vm3400_vm7, %v1161_v33, %v1092_v54  ;;  %v2738_v59 = vsel %vm3401_vm6, %v1154_v38, %v1074_v0  ;;  %vm690_vm5 = vmand %vm674_vm9, %vm682_vm10  ;;  %v587_v18 = vsel %vm3404_vm1, %v2255_v50, %v1944_v7  ;;  %v2772_v50 = vpop.permute.xlu1 %824  ;;  %vm926_vm7 = vcmp.lt.s32.totalorder %v910_v19, 16 }
 0x41d   :  { %1316 = vrot.lane.b32.xlu0 %v1188_v58, %s1807_s24  ;;  %1261 = vrot.lane.b32.xlu1 %v2430_v34, %s1805_s21  ;;  %vm763_vm3 = vmand %vm747_vm13, %vm755_vm8  ;;  %v714_v39 = vsel %vm690_vm5, %v660_v55, 0.0  ;;  %vm991_vm13 = vcmp.ge.s32.totalorder %v983_v2, 0  ;;  %vm999_vm8 = vcmp.lt.s32.totalorder %v983_v2, 16  ;;  %vm3410_vm5 = vcmp.lt.s32.totalorder %v1930_v45, 126 }
 0x41e   :  { %vm3403_vm12 = vmmov %vm3393_vm11  ;;  %vm609_vm11 = vcmp.lt.s32.totalorder %v593_v11, 16  ;;  %v1046_v53 = vrot.slane %v714_v39, 6  ;;  %vm845_vm1 = vcmp.ge.s32.totalorder %v837_v20, 0  ;;  %v839_v0 = vadd.s32 1, %v2248_v49 }
 0x41f   :  { %v733_v44 = vsel %vm3403_vm12, %v2340_v62, %v1994_v30  ;;  %vm617_vm15 = vmand %vm601_vm14, %vm609_vm11  ;;  %v2764_v62 = vpop.permute.xlu0 %822  ;;  %vm3413_vm14 = vcmp.lt.s32.totalorder %v1930_v45, 125  ;;  %vm992_vm11 = vcmp.ge.s32.totalorder %v984_v52, 0 }
 0x420   :  { %v787_v58 = vsel %vm763_vm3, %v733_v44, 0.0  ;;  %v641_v30 = vsel %vm617_vm15, %v587_v18, 0.0  ;;  %vm3406_vm9 = vmmov %vm3401_vm6  ;;  %v896_v1 = vpop.permute.xlu1 %895  ;;  %vm927_vm3 = vcmp.lt.s32.totalorder %v911_v6, 16  ;;  %vm1000_vm15 = vcmp.lt.s32.totalorder %v984_v52, 16 }
 0x421   :  { %1320 = vrot.lane.b32.xlu0 %v2676_v63, %s1807_s24  ;;  %1265 = vrot.lane.b32.xlu1 %v2495_v10, %s1805_s21  ;;  %v1070_v46 = vrot.slane %v787_v58, 4  ;;  %v1150_v48 = vsel %vm3405_vm4, %v641_v30, %v1046_v53  ;;  %vm3407_vm10 = vmmov %vm3399_vm2  ;;  %vm918_vm2 = vcmp.ge.s32.totalorder %v910_v19, 0  ;;  %v902_v42 = vsel %vm3410_vm5, %v2049_v16, %v896_v1 }
 0x422   :  { %vm2795_vm6 = vmand %vm918_vm2, %vm926_vm7  ;;  %vm853_vm4 = vcmp.lt.s32.totalorder %v837_v20, 16  ;;  %vm920_vm2 = vcmp.ge.s32.totalorder %v912_v37, 0  ;;  %vm928_vm7 = vcmp.lt.s32.totalorder %v912_v37, 16 }
 0x423   :  { %v1158_v7 = vsel %vm3406_vm9, %v1150_v48, %v1070_v46  ;;  %v898_v40 = vpop.permute.xlu0 %897  ;;  %vm2803_vm12 = vmand %vm991_vm13, %vm999_vm8  ;;  %v958_v61 = vsel %vm2795_vm6, %v902_v42, 0.0 }
 0x424   :  { %v2776_v41 = vsel %vm3407_vm10, %v1158_v7, %v1997_v31  ;;  %v971_v4 = vpop.permute.xlu1 %970  ;;  %vm2818_vm9 = vmand %vm919_vm0, %vm927_vm3  ;;  %v1110_v56 = vrot.slane %v958_v61, 6  ;;  %vm993_vm0 = vcmp.ge.s32.totalorder %v985_v28, 0  ;;  %vm1001_vm3 = vcmp.lt.s32.totalorder %v985_v28, 16 }
 0x425   :  { %1324 = vrot.lane.b32.xlu0 %v2713_v26, %s1807_s24  ;;  %1318 = vrot.lane.b32.xlu1 %v2430_v34, %s1807_s24  ;;  %vm3416_vm10 = vmmov %vm3410_vm5  ;;  %vm3422_vm5 = vcmp.lt.s32.totalorder %v1930_v45, 127 }
 0x426   :  { %v901_v27 = vsel %vm3416_vm10, %v896_v1, %v898_v40  ;;  %vm2827_vm13 = vmand %vm992_vm11, %vm1000_vm15  ;;  %v829_v54 = vsel %vm3422_vm5, %v2037_v43, %v2764_v62 }
 0x427   :  { %v969_v12 = vpop.permute.xlu0 %968  ;;  %vm3419_vm8 = vmmov %vm3413_vm14  ;;  %v959_v49 = vsel %vm2818_vm9, %v901_v27, 0.0  ;;  %vm847_vm9 = vcmp.ge.s32.totalorder %v839_v0, 0 }
 0x428   :  { %v975_v8 = vsel %vm3413_vm14, %v2056_v21, %v969_v12  ;;  %v974_v36 = vsel %vm3419_vm8, %v969_v12, %v971_v4  ;;  %vm2833_vm6 = vmand %vm845_vm1, %vm853_vm4  ;;  %vm854_vm14 = vcmp.lt.s32.totalorder %v838_v3, 16  ;;  %v1111_v46 = vrot.slane %v959_v49, 6 }
 0x429   :  { %1399 = vrot.lane.b32.xlu0 %v2495_v10, %s1813_s3  ;;  %1322 = vrot.lane.b32.xlu1 %v2495_v10, %s1807_s24  ;;  %v1031_v5 = vsel %vm2803_vm12, %v975_v8, 0.0  ;;  %vm846_vm12 = vcmp.ge.s32.totalorder %v838_v3, 0  ;;  %vm2848_vm11 = vmand %vm920_vm2, %vm928_vm7  ;;  %v1032_v44 = vsel %vm2827_vm13, %v974_v36, 0.0  ;;  %v885_v39 = vsel %vm2833_vm6, %v829_v54, 0.0 }
 0x42a   :  { %v1134_v33 = vrot.slane %v1031_v5, 4  ;;  %vm3425_vm15 = vmmov %vm3416_vm10  ;;  %vm3432_vm7 = vcmask 1041408   ;;  %vm855_vm13 = vcmp.lt.s32.totalorder %v839_v0, 16  ;;  %v1135_v7 = vrot.slane %v1032_v44, 4 }
 0x42b   :  { %v900_v55 = vsel %vm3425_vm15, %v898_v40, %v2049_v16  ;;  %vm2859_vm1 = vmand %vm993_vm0, %vm1001_vm3  ;;  %v1176_v30 = vsel %vm3432_vm7, %v885_v39, %v1110_v56  ;;  %vm3436_vm3 = vcmask 1045504  }
 0x42c   :  { %vm3428_vm4 = vmmov %vm3419_vm8  ;;  %v960_v48 = vsel %vm2848_vm11, %v900_v55, 0.0  ;;  %vm3433_vm8 = vcmask 1043456  }
 0x42d   :  { %1403 = vrot.lane.b32.xlu0 %v2776_v41, %s1813_s3  ;;  %1395 = vrot.lane.b32.xlu1 %v2430_v34, %s1813_s3  ;;  %v973_v18 = vsel %vm3428_vm4, %v971_v4, %v2056_v21  ;;  %vm2866_vm10 = vmand %vm846_vm12, %vm854_vm14  ;;  %v1184_v21 = vsel %vm3433_vm8, %v1176_v30, %v1134_v33  ;;  %v1112_v2 = vrot.slane %v960_v48, 6  ;;  %v1726_v30 = vunpack.i.l.bf16 %v2085_v13 }
 0x42e   :  { %vm3431_vm2 = vmmov %vm3422_vm5  ;;  %v1033_v40 = vsel %vm2859_vm1, %v973_v18, 0.0  ;;  %v1192_v6 = vsel %vm3436_vm3, %v1184_v21, 0.0  ;;  %v1720_v48 = vunpack.i.l.bf16 %v2095_v22 }
 0x42f   :  { %v828_v16 = vsel %vm3431_vm2, %v2764_v62, %v2772_v50  ;;  %vm863_vm6 = vmand %vm847_vm9, %vm855_vm13  ;;  %vm1222_vm9 = vcmp.lt.s32.totalorder %v1930_v45, 48  ;;  %vm1476_vm13 = vcmp.lt.s32.totalorder %v1930_v45, 96 }
 0x430   :  { %v886_v62 = vsel %vm2866_vm10, %v828_v16, 0.0  ;;  %vm3434_vm5 = vmmov %vm3431_vm2  ;;  %vm1281_vm10 = vcmp.lt.s32.totalorder %v1930_v45, 32  ;;  %vm1338_vm2 = vcmp.lt.s32.totalorder %v1930_v45, 16 }
 0x431   :  { %1454 = vrot.lane.b32.xlu0 %v2676_v63, %s1814_s25  ;;  %1397 = vrot.lane.b32.xlu1 %v2676_v63, %s1813_s3  ;;  %v827_v19 = vsel %vm3434_vm5, %v2772_v50, %v2037_v43  ;;  %vm3435_vm0 = vmmov %vm3432_vm7  ;;  %vm1419_vm7 = vcmp.lt.s32.totalorder %v1930_v45, 112 }
 0x432   :  { %v1177_v1 = vsel %vm3435_vm0, %v886_v62, %v1111_v46  ;;  %vm3437_vm12 = vmmov %vm3433_vm8  ;;  %v887_v12 = vsel %vm863_vm6, %v827_v19, 0.0  ;;  %v1748_v46 = vunpack.i.l.bf16 %v2113_v32  ;;  %v1733_v62 = vunpack.i.l.bf16 %v2089_v15 }
 0x433   :  { %v1185_v52 = vsel %vm3437_vm12, %v1177_v1, %v1135_v7  ;;  %vm3438_vm14 = vmmov %vm3435_vm0  ;;  %v1384_v7 = vmul.f32 %v2097_v23, %v2713_v26 }
 0x434   :  { %v1178_v20 = vsel %vm3438_vm14, %v887_v12, %v1112_v2  ;;  %vm3439_vm11 = vmmov %vm3436_vm3 }
 0x435   :  { %1458 = vrot.lane.b32.xlu0 %v2713_v26, %s1814_s25  ;;  %1401 = vrot.lane.b32.xlu1 %v2713_v26, %s1813_s3  ;;  %v2898_v38 = vsel %vm3439_vm11, %v1185_v52, 0.0  ;;  %vm3440_vm15 = vmmov %vm3433_vm8  ;;  %vm1533_vm8 = vcmp.lt.s32.totalorder %v1930_v45, 80 }
 0x436   :  { %vm3441_vm1 = vmmov %vm3436_vm3 }
 0x437   :  { %vm3442_vm4 = vmmov %vm3441_vm1 }
 0x438   :  { %v1171_v42 = vsel %vm3442_vm4, %v2738_v59, %v1997_v31 }
 0x439   :  { %1509 = vrot.lane.b32.xlu0 %v2430_v34, %s1815_s26  ;;  %1452 = vrot.lane.b32.xlu1 %v2430_v34, %s1814_s25 }
 0x43d   :  { %1513 = vrot.lane.b32.xlu0 %v2495_v10, %s1815_s26  ;;  %1456 = vrot.lane.b32.xlu1 %v2495_v10, %s1814_s25 }
 0x441   :  { %1517 = vrot.lane.b32.xlu0 %v2776_v41, %s1815_s26  ;;  %1460 = vrot.lane.b32.xlu1 %v2776_v41, %s1814_s25  ;;  %v1136_v41 = vrot.slane %v1033_v40, 4 }
 0x443   :  { %v1186_v43 = vsel %vm3440_vm15, %v1178_v20, %v1136_v41 }
 0x444   :  { %v2906_v50 = vsel %vm3441_vm1, %v1186_v43, 0.0 }
 0x445   :  { %1511 = vrot.lane.b32.xlu1 %v2676_v63, %s1815_s26  ;;  %1212 = vrot.lane.b32.xlu0 %v1192_v6, %s1806_s2 }
 0x449   :  { %1515 = vrot.lane.b32.xlu1 %v2713_v26, %s1815_s26  ;;  %1216 = vrot.lane.b32.xlu0 %v2898_v38, %s1806_s2 }
 0x44d   :  { %1214 = vrot.lane.b32.xlu1 %v2732_v9, %s1806_s2  ;;  %1220 = vrot.lane.b32.xlu0 %v2906_v50, %s1806_s2 }
 0x451   :  { %1218 = vrot.lane.b32.xlu1 %v2735_v17, %s1806_s2  ;;  %1273 = vrot.lane.b32.xlu0 %v2732_v9, %s1805_s21 }
 0x455   :  { %1271 = vrot.lane.b32.xlu1 %v1192_v6, %s1805_s21  ;;  %1277 = vrot.lane.b32.xlu0 %v2735_v17, %s1805_s21 }
 0x459   :  { %1275 = vrot.lane.b32.xlu1 %v2898_v38, %s1805_s21  ;;  %1330 = vrot.lane.b32.xlu0 %v2732_v9, %s1807_s24 }
 0x45d   :  { %1279 = vrot.lane.b32.xlu1 %v2906_v50, %s1805_s21  ;;  %1334 = vrot.lane.b32.xlu0 %v2735_v17, %s1807_s24 }
 0x461   :  { %1328 = vrot.lane.b32.xlu1 %v1192_v6, %s1807_s24  ;;  %1407 = vrot.lane.b32.xlu0 %v2732_v9, %s1813_s3 }
 0x465   :  { %1332 = vrot.lane.b32.xlu1 %v2898_v38, %s1807_s24  ;;  %1411 = vrot.lane.b32.xlu0 %v2735_v17, %s1813_s3 }
 0x469   :  { %1336 = vrot.lane.b32.xlu1 %v2906_v50, %s1807_s24  ;;  %1415 = vrot.lane.b32.xlu0 %v1171_v42, %s1813_s3  ;;  %v1203_v31 = vpop.permute.xlu0 %1202 }
 0x46a   :  { %v1229_v12 = vsel %vm1222_vm9, %v1720_v48, %v1203_v31 }
 0x46d   :  { %1409 = vrot.lane.b32.xlu1 %v2898_v38, %s1813_s3  ;;  %1466 = vrot.lane.b32.xlu0 %v2898_v38, %s1814_s25 }
 0x46e   :  { %v1207_v59 = vpop.permute.xlu0 %1206 }
 0x46f   :  { %v1227_v20 = vsel %vm1222_vm9, %v1203_v31, %v1207_v59  ;;  %v3443_v59 = vld [vmem:[#allocation2_spill] sm:$0xff] }
 0x471   :  { %1413 = vrot.lane.b32.xlu1 %v2906_v50, %s1813_s3  ;;  %1470 = vrot.lane.b32.xlu0 %v2906_v50, %s1814_s25 }
 0x475   :  { %1464 = vrot.lane.b32.xlu1 %v2732_v9, %s1814_s25  ;;  %1521 = vrot.lane.b32.xlu0 %v2732_v9, %s1815_s26 }
 0x479   :  { %1468 = vrot.lane.b32.xlu1 %v2735_v17, %s1814_s25  ;;  %1525 = vrot.lane.b32.xlu0 %v2735_v17, %s1815_s26 }
 0x47b   :  { %v1201_v37 = vpop.permute.xlu1 %1200  ;;  %v1260_v60 = vpop.permute.xlu0 %1259 }
 0x47d   :  { %1472 = vrot.lane.b32.xlu1 %v1171_v42, %s1814_s25  ;;  %1529 = vrot.lane.b32.xlu0 %v1171_v42, %s1815_s26 }
 0x481   :  { %1523 = vrot.lane.b32.xlu1 %v2898_v38, %s1815_s26 }
 0x484   :  { %v1205_v8 = vpop.permute.xlu1 %1204  ;;  %v1264_v28 = vpop.permute.xlu0 %1263 }
 0x485   :  { %1527 = vrot.lane.b32.xlu1 %v2906_v50, %s1815_s26  ;;  %v1230_v19 = vsel %vm1222_vm9, %v1201_v37, %v1205_v8  ;;  %v1289_v6 = vsel %vm1281_vm10, %v1260_v60, %v1264_v28 }
 0x48b   :  { %v1209_v4 = vpop.permute.xlu1 %1208  ;;  %v1268_v3 = vpop.permute.xlu0 %1267 }
 0x48c   :  { %v1228_v54 = vsel %vm1222_vm9, %v1205_v8, %v1209_v4  ;;  %v1287_v56 = vsel %vm1281_vm10, %v1264_v28, %v1268_v3  ;;  %v1245_v3 = vmul.f32 %v2119_v35, %v1230_v19 }
 0x48d   :  { %v1246_v33 = vmul.f32 %v2119_v35, %v1228_v54  ;;  %v1303_v11 = vmul.f32 %v2087_v14, %v1287_v56  ;;  %v1241_v54 = vmul.f32 %v3443_v59, %v1229_v12 }
 0x48f   :  { %v1262_v61 = vpop.permute.xlu1 %1261  ;;  %v1317_v47 = vpop.permute.xlu0 %1316  ;;  %v1311_v58 = vadd.f32 %v1303_v11, %v1246_v33 }
 0x490   :  { %v1288_v41 = vsel %vm1281_vm10, %v1726_v30, %v1262_v61 }
 0x491   :  { %v1298_v31 = vmul.f32 %v2099_v24, %v1288_v41 }
 0x493   :  { %v1266_v27 = vpop.permute.xlu1 %1265  ;;  %v1321_v5 = vpop.permute.xlu0 %1320  ;;  %v1306_v11 = vadd.f32 %v1298_v31, %v1241_v54  ;;  %v3450_v54 = vld [vmem:[#allocation5_spill] sm:$0xff] }
 0x494   :  { %v1286_v2 = vsel %vm1281_vm10, %v1262_v61, %v1266_v27  ;;  %v1346_v37 = vsel %vm1338_vm2, %v1317_v47, %v1321_v5  ;;  %v1302_v61 = vmul.f32 %v2087_v14, %v1289_v6  ;;  %v1242_v27 = vmul.f32 %v3443_v59, %v1227_v20  ;;  %v3447_v6 = vld [vmem:[#allocation6_spill] sm:$0xff] }
 0x495   :  { %v1299_v42 = vmul.f32 %v2099_v24, %v1286_v2  ;;  %v1359_v47 = vmul.f32 %v2103_v51, %v1346_v37 }
 0x496   :  { %v1310_v33 = vadd.f32 %v1302_v61, %v1245_v3  ;;  %v3449_v61 = vld [vmem:[#allocation10_spill] sm:$0xff] }
 0x497   :  { %v1319_v0 = vpop.permute.xlu1 %1318  ;;  %v1325_v29 = vpop.permute.xlu0 %1324  ;;  %v1758_v31 = vunpack.i.l.bf16 %v3449_v61 }
 0x498   :  { %v1344_v49 = vsel %vm1338_vm2, %v1321_v5, %v1325_v29  ;;  %v1345_v60 = vsel %vm1338_vm2, %v1733_v62, %v1319_v0  ;;  %v3444_v29 = vld [vmem:[#allocation3_spill] sm:$0xff] }
 0x499   :  { %v1360_v39 = vmul.f32 %v2103_v51, %v1344_v49  ;;  %v1355_v5 = vmul.f32 %v3444_v29, %v1345_v60 }
 0x49b   :  { %v1323_v36 = vpop.permute.xlu1 %1322  ;;  %v1400_v57 = vpop.permute.xlu0 %1399  ;;  %v1368_v16 = vadd.f32 %v1360_v39, %v1311_v58 }
 0x49c   :  { %v1343_v43 = vsel %vm1338_vm2, %v1319_v0, %v1323_v36  ;;  %v1307_v0 = vadd.f32 %v1299_v42, %v1242_v27 }
 0x49d   :  { %v1392_v26 = vadd.f32 %v1384_v7, %v1368_v16  ;;  %v1356_v36 = vmul.f32 %v3444_v29, %v1343_v43  ;;  %v1367_v16 = vadd.f32 %v1359_v47, %v1310_v33  ;;  %v3445_v7 = vld [vmem:[#allocation4_spill] sm:$0xff] }
 0x49e   :  { %v1379_v62 = vmul.f32 %v3445_v7, %v2430_v34  ;;  %v1380_v19 = vmul.f32 %v3445_v7, %v2495_v10  ;;  %v3448_v43 = vld [vmem:[#allocation8_spill] sm:$0xff] }
 0x49f   :  { %v1396_v55 = vpop.permute.xlu1 %1395  ;;  %v1404_v44 = vpop.permute.xlu0 %1403  ;;  %v1364_v39 = vadd.f32 %v1356_v36, %v1307_v0 }
 0x4a0   :  { %v1426_v30 = vsel %vm1419_vm7, %v1396_v55, %v1400_v57  ;;  %v1424_v48 = vsel %vm1419_vm7, %v1400_v57, %v1404_v44  ;;  %v3446_v44 = vld [vmem:[#allocation11_spill] sm:$0xff] }
 0x4a1   :  { %v1753_v34 = vunpack.i.l.bf16 %v3446_v44  ;;  %v1436_v41 = vmul.f32 %v3447_v6, %v1426_v30  ;;  %v1388_v10 = vadd.f32 %v1380_v19, %v1364_v39  ;;  %v3451_v30 = vld [vmem:[#allocation7_spill] sm:$0xff] }
 0x4a3   :  { %v1398_v18 = vpop.permute.xlu1 %1397  ;;  %v2974_v53 = vpop.permute.xlu0 %1454 }
 0x4a7   :  { %v1402_v21 = vpop.permute.xlu1 %1401  ;;  %v1459_v40 = vpop.permute.xlu0 %1458 }
 0x4a8   :  { %v1425_v1 = vsel %vm1419_vm7, %v1402_v21, %v1748_v46  ;;  %v1427_v58 = vsel %vm1419_vm7, %v1398_v18, %v1402_v21  ;;  %v1363_v46 = vadd.f32 %v1355_v5, %v1306_v11  ;;  %v1383_v18 = vmul.f32 %v2097_v23, %v2676_v63 }
 0x4a9   :  { %v1441_v52 = vmul.f32 %v2101_v25, %v1425_v1  ;;  %v1440_v21 = vmul.f32 %v2101_v25, %v1427_v58  ;;  %v1482_v63 = vsel %vm1476_vm13, %v1459_v40, %v1753_v34  ;;  %v1484_v20 = vsel %vm1476_vm13, %v2974_v53, %v1459_v40 }
 0x4aa   :  { %v1391_v12 = vadd.f32 %v1383_v18, %v1367_v16  ;;  %v1497_v47 = vmul.f32 %v3450_v54, %v1484_v20  ;;  %v1498_v5 = vmul.f32 %v3450_v54, %v1482_v63 }
 0x4ab   :  { %v1449_v8 = vadd.f32 %v1441_v52, %v1392_v26  ;;  %v1453_v28 = vpop.permute.xlu1 %1452  ;;  %v1510_v4 = vpop.permute.xlu0 %1509  ;;  %v1437_v26 = vmul.f32 %v3447_v6, %v1424_v48  ;;  %v1387_v52 = vadd.f32 %v1379_v62, %v1363_v46  ;;  %v3452_v62 = vld [vmem:[#allocation9_spill] sm:$0xff] }
 0x4ac   :  { %v1448_v3 = vadd.f32 %v1440_v21, %v1391_v12 }
 0x4ad   :  { %v1444_v27 = vadd.f32 %v1436_v41, %v1387_v52  ;;  %v1445_v36 = vadd.f32 %v1437_v26, %v1388_v10  ;;  %v1506_v58 = vadd.f32 %v1498_v5, %v1449_v8 }
 0x4ae   :  { %v1505_v39 = vadd.f32 %v1497_v47, %v1448_v3 }
 0x4af   :  { %v1457_v56 = vpop.permute.xlu1 %1456  ;;  %v1514_v49 = vpop.permute.xlu0 %1513 }
 0x4b0   :  { %v1483_v55 = vsel %vm1476_vm13, %v1453_v28, %v1457_v56  ;;  %v1540_v0 = vsel %vm1533_vm8, %v1510_v4, %v1514_v49 }
 0x4b1   :  { %v1493_v42 = vmul.f32 %v3448_v43, %v1483_v55  ;;  %v1550_v48 = vmul.f32 %v3451_v30, %v1540_v0 }
 0x4b3   :  { %v1461_v2 = vpop.permute.xlu1 %1460  ;;  %v1518_v1 = vpop.permute.xlu0 %1517  ;;  %v1501_v40 = vadd.f32 %v1493_v42, %v1444_v27 }
 0x4b4   :  { %v1481_v57 = vsel %vm1476_vm13, %v1457_v56, %v1461_v2  ;;  %v1538_v53 = vsel %vm1533_vm8, %v1514_v49, %v1518_v1 }
 0x4b5   :  { %v1494_v37 = vmul.f32 %v3448_v43, %v1481_v57  ;;  %v1551_v4 = vmul.f32 %v3451_v30, %v1538_v53  ;;  %v1558_v2 = vadd.f32 %v1550_v48, %v1501_v40 }
 0x4b7   :  { %v1512_v60 = vpop.permute.xlu1 %1511  ;;  %v3042_v28 = vpop.permute.xlu0 %1212  ;;  %v1502_v56 = vadd.f32 %v1494_v37, %v1445_v36 }
 0x4b9   :  { %v1559_v1 = vadd.f32 %v1551_v4, %v1502_v56 }
 0x4bb   :  { %v1516_v33 = vpop.permute.xlu1 %1515  ;;  %v3051_v11 = vpop.permute.xlu0 %1216 }
 0x4bc   :  { %v1539_v16 = vsel %vm1533_vm8, %v1516_v33, %v1758_v31  ;;  %v1541_v46 = vsel %vm1533_vm8, %v1512_v60, %v1516_v33 }
 0x4bd   :  { %v1554_v19 = vmul.f32 %v3452_v62, %v1541_v46  ;;  %v1555_v49 = vmul.f32 %v3452_v62, %v1539_v16 }
 0x4bf   :  { %v1562_v18 = vadd.f32 %v1554_v19, %v1505_v39  ;;  %v1563_v21 = vadd.f32 %v1555_v49, %v1506_v58  ;;  %v1215_v55 = vpop.permute.xlu1 %1214  ;;  %v1221_v8 = vpop.permute.xlu0 %1220 }
 0x4c1   :  { %v1566_v57 = vadd.f32 %v1562_v18, %v1558_v2  ;;  %v1573_v34 = vadd.f32 %v1563_v21, %v1559_v1 }
 0x4c3   :  { %v1567_v41 = vrot.slane %v1566_v57, 4  ;;  %v1574_v10 = vrot.slane %v1573_v34, 4  ;;  %v1219_v26 = vpop.permute.xlu1 %1218  ;;  %v1274_v52 = vpop.permute.xlu0 %1273 }
 0x4c5   :  { %v1568_v12 = vadd.f32 %v1567_v41, %v1566_v57  ;;  %v1575_v63 = vadd.f32 %v1574_v10, %v1573_v34  ;;  %v1721_v34 = vunpack.i.h.bf16 %v2095_v22  ;;  %v1727_v41 = vunpack.i.h.bf16 %v2085_v13 }
 0x4c6   :  { %v1226_v10 = vsel %vm1222_vm9, %v3042_v28, %v3051_v11  ;;  %v1224_v13 = vsel %vm1222_vm9, %v3051_v11, %v1221_v8  ;;  %v1223_v28 = vsel %vm1222_vm9, %v1215_v55, %v1219_v26 }
 0x4c7   :  { %v1569_v20 = vrot.slane %v1568_v12, 2  ;;  %v1576_v42 = vrot.slane %v1575_v63, 2  ;;  %v1272_v37 = vpop.permute.xlu1 %1271  ;;  %v1278_v60 = vpop.permute.xlu0 %1277 }
 0x4c8   :  { %v1282_v22 = vsel %vm1281_vm10, %v1274_v52, %v1278_v60 }
 0x4c9   :  { %v1570_v3 = vadd.f32 %v1569_v20, %v1568_v12  ;;  %v1577_v31 = vadd.f32 %v1576_v42, %v1575_v63  ;;  %v1225_v12 = vsel %vm1222_vm9, %v1721_v34, %v1215_v55  ;;  %v1734_v42 = vunpack.i.h.bf16 %v2089_v15 }
 0x4ca   :  { %v1247_v15 = vmul.f32 %v2119_v35, %v1226_v10  ;;  %v1301_v55 = vmul.f32 %v2099_v24, %v1282_v22 }
 0x4cb   :  { %v1571_v27 = vrot.slane %v1570_v3, 1  ;;  %v1578_v36 = vrot.slane %v1577_v31, 1  ;;  %v1276_v47 = vpop.permute.xlu1 %1275  ;;  %v1331_v5 = vpop.permute.xlu0 %1330 }
 0x4cd   :  { %v1572_v0 = vadd.f32 %v1571_v27, %v1570_v3  ;;  %v1579_v53 = vadd.f32 %v1578_v36, %v1577_v31  ;;  %v1284_v3 = vsel %vm1281_vm10, %v1727_v41, %v1274_v52  ;;  %v1285_v31 = vsel %vm1281_vm10, %v1272_v37, %v1276_v47 }
 0x4ce   :  { %v1243_v36 = vmul.f32 %v3443_v59, %v1225_v12  ;;  %v1341_v52 = vsel %vm1338_vm2, %v1734_v42, %v1331_v5  ;;  %v1300_v11 = vmul.f32 %v2099_v24, %v1284_v3  ;;  %v3453_v24 = vld [vmem:[#allocation14_spill] sm:$0xff]  ;;  %v1749_v41 = vunpack.i.h.bf16 %v2113_v32 }
 0x4cf   :  { %v1656_v40 = vmul.f32 -1.442695, %v1572_v0  ;;  %v1657_v56 = vmul.f32 -1.442695, %v1579_v53  ;;  %v1280_v33 = vpop.permute.xlu1 %1279  ;;  %v1335_v39 = vpop.permute.xlu0 %1334  ;;  %v1248_v53 = vmul.f32 %v2119_v35, %v1224_v13 }
 0x4d0   :  { %v1283_v27 = vsel %vm1281_vm10, %v1276_v47, %v1280_v33  ;;  %v1339_v60 = vsel %vm1338_vm2, %v1331_v5, %v1335_v39  ;;  %v1304_v5 = vmul.f32 %v2087_v14, %v1285_v31 }
 0x4d1   :  { %1778 = vpow2.f32 %v1656_v40  ;;  %v1244_v40 = vmul.f32 %v3443_v59, %v1223_v28 }
 0x4d2   :  { %1780 = vpow2.f32 %v1657_v56  ;;  %v1305_v56 = vmul.f32 %v2087_v14, %v1283_v27  ;;  %v1308_v14 = vadd.f32 %v1300_v11, %v1243_v36  ;;  %v1381_v36 = vmul.f32 %v3445_v7, %v2732_v9 }
 0x4d3   :  { %v1329_v58 = vpop.permute.xlu1 %1328  ;;  %v3061_v16 = vpop.permute.xlu0 %1407 }
 0x4d4   :  { %v1313_v32 = vadd.f32 %v1305_v56, %v1248_v53 }
 0x4d7   :  { %v1333_v46 = vpop.permute.xlu1 %1332  ;;  %v3063_v48 = vpop.permute.xlu0 %1411 }
 0x4d8   :  { %v1342_v8 = vsel %vm1338_vm2, %v1329_v58, %v1333_v46  ;;  %v1422_v31 = vsel %vm1419_vm7, %v3061_v16, %v3063_v48 }
 0x4d9   :  { %v1361_v35 = vmul.f32 %v2103_v51, %v1342_v8 }
 0x4db   :  { %v1779_v4 = vpop.eup %1778  ;;  %v1337_v19 = vpop.permute.xlu1 %1336 }
 0x4dc   :  { %v3065_v49 = vpop.permute.xlu0 %1415  ;;  %v1781_v2 = vpop.eup %1780  ;;  %v1606_v1 = vadd.f32 1.0, %v1779_v4  ;;  %v1340_v26 = vsel %vm1338_vm2, %v1333_v46, %v1337_v19  ;;  %v3454_v4 = vld [vmem:[#allocation12_spill] sm:$0xff]  ;;  %v1358_v46 = vmul.f32 %v3444_v29, %v1339_v60  ;;  %v3455_v19 = vld [vmem:[#allocation15_spill] sm:$0xff] }
 0x4dd   :  { %v1607_v18 = vadd.f32 1.0, %v1781_v2  ;;  %v1357_v2 = vmul.f32 %v3444_v29, %v1341_v52  ;;  %v1362_v59 = vmul.f32 %v2103_v51, %v1340_v26  ;;  %v1309_v29 = vadd.f32 %v1301_v55, %v1244_v40 }
 0x4de   :  { %1782 = vrcp.f32 %v1606_v1  ;;  %v1312_v51 = vadd.f32 %v1304_v5, %v1247_v15  ;;  %v1420_v15 = vsel %vm1419_vm7, %v3063_v48, %v3065_v49  ;;  %v1382_v52 = vmul.f32 %v3445_v7, %v2735_v17 }
 0x4df   :  { %1784 = vrcp.f32 %v1607_v18  ;;  %v1410_v21 = vpop.permute.xlu1 %1409  ;;  %v3456_v18 = vld [vmem:[#allocation13_spill] sm:$0xff]  ;;  %v1365_v12 = vadd.f32 %v1357_v2, %v1308_v14  ;;  %v1366_v42 = vadd.f32 %v1358_v46, %v1309_v29  ;;  %v1370_v27 = vadd.f32 %v1362_v59, %v1313_v32 }
 0x4e0   :  { %v3067_v57 = vpop.permute.xlu0 %1466  ;;  %v1369_v28 = vadd.f32 %v1361_v35, %v1312_v51  ;;  %v1754_v49 = vunpack.i.h.bf16 %v3446_v44  ;;  %v1438_v17 = vmul.f32 %v3447_v6, %v1422_v31  ;;  %v1759_v40 = vunpack.i.h.bf16 %v3449_v61 }
 0x4e1   :  { %v1389_v7 = vadd.f32 %v1381_v36, %v1365_v12  ;;  %v1390_v55 = vadd.f32 %v1382_v52, %v1366_v42 }
 0x4e3   :  { %v1414_v63 = vpop.permute.xlu1 %1413  ;;  %v1446_v5 = vadd.f32 %v1438_v17, %v1389_v7  ;;  %v3460_v17 = vld [vmem:[#allocation17_spill] sm:$0xff] }
 0x4e4   :  { %v3077_v20 = vpop.permute.xlu0 %1470  ;;  %v1421_v3 = vsel %vm1419_vm7, %v1414_v63, %v1749_v41  ;;  %v1423_v22 = vsel %vm1419_vm7, %v1410_v21, %v1414_v63  ;;  %v1386_v21 = vmul.f32 %v2097_v23, %v2906_v50  ;;  %v1385_v63 = vmul.f32 %v2097_v23, %v2898_v38 }
 0x4e5   :  { %v1442_v16 = vmul.f32 %v2101_v25, %v1423_v22  ;;  %v1443_v11 = vmul.f32 %v2101_v25, %v1421_v3  ;;  %v1439_v50 = vmul.f32 %v3447_v6, %v1420_v15  ;;  %v1478_v25 = vsel %vm1476_vm13, %v3077_v20, %v1754_v49 }
 0x4e6   :  { %v1393_v23 = vadd.f32 %v1385_v63, %v1369_v28  ;;  %v1394_v38 = vadd.f32 %v1386_v21, %v1370_v27  ;;  %v1480_v8 = vsel %vm1476_vm13, %v3067_v57, %v3077_v20 }
 0x4e7   :  { %v1465_v37 = vpop.permute.xlu1 %1464  ;;  %v1447_v56 = vadd.f32 %v1439_v50, %v1390_v55 }
 0x4e8   :  { %v3105_v47 = vpop.permute.xlu0 %1521  ;;  %v1783_v0 = vpop.eup %1782  ;;  %v1450_v6 = vadd.f32 %v1442_v16, %v1393_v23  ;;  %v1451_v53 = vadd.f32 %v1443_v11, %v1394_v38  ;;  %v3458_v11 = vld [vmem:[#allocation19_spill] sm:$0xff] }
 0x4e9   :  { %v1785_v33 = vpop.eup %1784  ;;  %v1618_v39 = vmul.f32 %v1783_v0, %v3453_v24  ;;  %v1620_v58 = vmul.f32 %v1783_v0, %v3454_v4  ;;  %v1500_v24 = vmul.f32 %v3450_v54, %v1478_v25 }
 0x4ea   :  { %v1619_v1 = vmul.f32 %v1785_v33, %v3455_v19  ;;  %v1621_v34 = vmul.f32 %v1785_v33, %v3456_v18  ;;  %v1499_v33 = vmul.f32 %v3450_v54, %v1480_v8 }
 0x4eb   :  { %1622 = vst [vmem:[%s3206_s4] sm:$0xff] %v1618_v39  ;;  %1624 = vst [vmem:[%s3206_s4 + $0x10] sm:$0xff] %v1620_v58  ;;  %v1469_v10 = vpop.permute.xlu1 %1468  ;;  %v1508_v2 = vadd.f32 %v1500_v24, %v1451_v53 }
 0x4ec   :  { %1623 = vst [vmem:[%s3206_s4 + $0x8] sm:$0xff] %v1619_v1  ;;  %1625 = vst [vmem:[%s3206_s4 + $0x18] sm:$0xff] %v1621_v34  ;;  %v1526_v13 = vpop.permute.xlu0 %1525  ;;  %v1479_v48 = vsel %vm1476_vm13, %v1465_v37, %v1469_v10  ;;  %v1507_v58 = vadd.f32 %v1499_v33, %v1450_v6 }
 0x4ed   :  { %v1495_v26 = vmul.f32 %v3448_v43, %v1479_v48  ;;  %v1536_v57 = vsel %vm1533_vm8, %v3105_v47, %v1526_v13 }
 0x4ee   :  { %v1552_v54 = vmul.f32 %v3451_v30, %v1536_v57 }
 0x4ef   :  { %v1473_v60 = vpop.permute.xlu1 %1472 }
 0x4f0   :  { %v1477_v9 = vsel %vm1476_vm13, %v1469_v10, %v1473_v60  ;;  %v1530_v37 = vpop.permute.xlu0 %1529  ;;  %v3457_v60 = vld [vmem:[#allocation18_spill] sm:$0xff] }
 0x4f1   :  { %v1496_v44 = vmul.f32 %v3448_v43, %v1477_v9  ;;  %v1534_v20 = vsel %vm1533_vm8, %v1526_v13, %v1530_v37  ;;  %v1503_v43 = vadd.f32 %v1495_v26, %v1446_v5  ;;  %v3459_v9 = vld [vmem:[#allocation16_spill] sm:$0xff] }
 0x4f2   :  { %v1553_v19 = vmul.f32 %v3451_v30, %v1534_v20 }
 0x4f3   :  { %v1524_v0 = vpop.permute.xlu1 %1523  ;;  %v1504_v39 = vadd.f32 %v1496_v44, %v1447_v56  ;;  %v1560_v18 = vadd.f32 %v1552_v54, %v1503_v43 }
 0x4f5   :  { %v1561_v34 = vadd.f32 %v1553_v19, %v1504_v39 }
 0x4f7   :  { %v1528_v4 = vpop.permute.xlu1 %1527 }
 0x4f8   :  { %v1535_v61 = vsel %vm1533_vm8, %v1528_v4, %v1759_v40  ;;  %v1537_v46 = vsel %vm1533_vm8, %v1524_v0, %v1528_v4 }
 0x4f9   :  { %v1556_v47 = vmul.f32 %v3452_v62, %v1537_v46  ;;  %v1557_v1 = vmul.f32 %v3452_v62, %v1535_v61 }
 0x4fb   :  { %v1564_v35 = vadd.f32 %v1556_v47, %v1507_v58  ;;  %v1565_v59 = vadd.f32 %v1557_v1, %v1508_v2 }
 0x4fd   :  { %v1580_v41 = vadd.f32 %v1564_v35, %v1560_v18  ;;  %v1587_v14 = vadd.f32 %v1565_v59, %v1561_v34 }
 0x4ff   :  { %v1581_v29 = vrot.slane %v1580_v41, 4  ;;  %v1588_v10 = vrot.slane %v1587_v14, 4 }
 0x501   :  { %v1582_v51 = vadd.f32 %v1581_v29, %v1580_v41  ;;  %v1589_v32 = vadd.f32 %v1588_v10, %v1587_v14 }
 0x503   :  { %v1583_v45 = vrot.slane %v1582_v51, 2  ;;  %v1590_v12 = vrot.slane %v1589_v32, 2 }
 0x505   :  { %v1584_v42 = vadd.f32 %v1583_v45, %v1582_v51  ;;  %v1591_v3 = vadd.f32 %v1590_v12, %v1589_v32 }
 0x507   :  { %v1585_v22 = vrot.slane %v1584_v42, 1  ;;  %v1592_v30 = vrot.slane %v1591_v3, 1 }
 0x509   :  { %v1586_v13 = vadd.f32 %v1585_v22, %v1584_v42  ;;  %v1593_v28 = vadd.f32 %v1592_v30, %v1591_v3 }
 0x50b   :  { %v1658_v31 = vmul.f32 -1.442695, %v1586_v13  ;;  %v1659_v62 = vmul.f32 -1.442695, %v1593_v28 }
 0x50d   :  { %1786 = vpow2.f32 %v1658_v31 }
 0x50e   :  { %1788 = vpow2.f32 %v1659_v62 }
 0x517   :  { %v1787_v27 = vpop.eup %1786 }
 0x518   :  { %v1789_v15 = vpop.eup %1788  ;;  %v1608_v36 = vadd.f32 1.0, %v1787_v27 }
 0x519   :  { %v1609_v52 = vadd.f32 1.0, %v1789_v15 }
 0x51a   :  { %1790 = vrcp.f32 %v1608_v36 }
 0x51b   :  { %1792 = vrcp.f32 %v1609_v52 }
 0x524   :  { %v1791_v21 = vpop.eup %1790 }
 0x525   :  { %v1793_v63 = vpop.eup %1792  ;;  %v1626_v16 = vmul.f32 %v1791_v21, %v3457_v60  ;;  %v1628_v48 = vmul.f32 %v1791_v21, %v3458_v11 }
 0x526   :  { %v1627_v49 = vmul.f32 %v1793_v63, %v3459_v9  ;;  %v1629_v50 = vmul.f32 %v1793_v63, %v3460_v17 }
 0x527   :  { %1630 = vst [vmem:[%s3206_s4 + $0x20] sm:$0xff] %v1626_v16  ;;  %1632 = vst [vmem:[%s3206_s4 + $0x30] sm:$0xff] %v1628_v48 }
 0x528   :  { %1631 = vst [vmem:[%s3206_s4 + $0x28] sm:$0xff] %v1627_v49  ;;  %1633 = vst [vmem:[%s3206_s4 + $0x38] sm:$0xff] %v1629_v50 }

</bundles_post_ra>
